<compile_context>
chip_gen: v7x
topology: tpu7x:2x2x1
jax: 0.10.0
libtpu: 0.0.40
codegen_flags: <defaults>
</compile_context>

<pallas_src>
import math
from functools import partial

import jax
import jax.numpy as jnp
from jax import lax
from jax.experimental import pallas as pl
from jax.experimental.pallas import tpu as pltpu

LRELU_SLOPE = 0.1
LN_EPS = 1e-5
LEAD = 8  # aligned left-pad rows for the Mamba causal conv (requires d_conv-1 <= 8)


def _silu(x):
    return x * (1.0 / (1.0 + jnp.exp(-x)))


def _softplus(x):
    return jnp.where(x > 20.0, x, jnp.log(1.0 + jnp.exp(jnp.minimum(x, 20.0))))


def _lrelu(x):
    return jnp.where(x >= 0.0, x, LRELU_SLOPE * x)


def _ln(x, g, b):
    mu = jnp.mean(x, axis=-1, keepdims=True)
    var = jnp.mean((x - mu) ** 2, axis=-1, keepdims=True)
    return (x - mu) * lax.rsqrt(var + LN_EPS) * g + b


# ---------------------------------------------------------------------------
# Kernel 1: full ConvBlock conv path (both convs fused in one kernel).
#   conv1: right-pad -> im2col -> MXU matmul -> ChannelLayerNorm -> LeakyReLU
#   conv2: same on conv1's output, + residual, optional fused AvgPool1d(2).
# ---------------------------------------------------------------------------
def _conv_pair_kernel(x_ref, w1_ref, b1_ref, g1_ref, be1_ref,
                      w2_ref, b2_ref, g2_ref, be2_ref, o_ref,
                      xpad1, xim1, xpad2, xim2, *rest, ksize, do_pool):
    L = x_ref.shape[1]
    Cin = x_ref.shape[2]
    Cout = w1_ref.shape[1]

    x = x_ref[0]                                         # (L, Cin) f32

    # --- conv1 ---  (bf16 pad buffer: im2col copies are pure moves)
    xpad1[0:L, :] = x.astype(jnp.bfloat16)
    xpad1[L:L + 8, :] = jnp.zeros((8, Cin), jnp.bfloat16)
    for k in range(ksize):
        xim1[:, k * Cin:(k + 1) * Cin] = xpad1[k:k + L, :]
    a1 = jnp.dot(xim1[...], w1_ref[...],
                 preferred_element_type=jnp.float32) + b1_ref[...]
    h1 = _lrelu(_ln(a1, g1_ref[...], be1_ref[...]))      # (L, Cout) f32

    # --- conv2 (+ residual h1) ---
    xpad2[0:L, :] = h1.astype(jnp.bfloat16)
    xpad2[L:L + 8, :] = jnp.zeros((8, Cout), jnp.bfloat16)
    for k in range(ksize):
        xim2[:, k * Cout:(k + 1) * Cout] = xpad2[k:k + L, :]
    a2 = jnp.dot(xim2[...], w2_ref[...],
                 preferred_element_type=jnp.float32) + b2_ref[...]
    h2 = _lrelu(_ln(a2, g2_ref[...], be2_ref[...]))
    y = h1 + h2

    if do_pool:
        (y_sc,) = rest
        y_sc[...] = y
        o_ref[0] = 0.5 * (y_sc[pl.ds(0, L // 2, stride=2), :]
                          + y_sc[pl.ds(1, L // 2, stride=2), :])
    else:
        o_ref[0] = y


def conv_pair(x, bp):
    # x: (B, L, Cin); weights pre-flattened for im2col: (K*Cin, Cout) bf16
    B, L, Cin = x.shape
    K = bp["ksize"]
    Cout = bp["w1"].shape[1]
    do_pool = not bp["bottleneck"]
    Lout = L // 2 if do_pool else L

    scratch = [
        pltpu.VMEM((L + 8, Cin), jnp.bfloat16),          # conv1 right-pad buffer
        pltpu.VMEM((L, K * Cin), jnp.bfloat16),          # conv1 im2col buffer
        pltpu.VMEM((L + 8, Cout), jnp.bfloat16),         # conv2 right-pad buffer
        pltpu.VMEM((L, K * Cout), jnp.bfloat16),         # conv2 im2col buffer
    ]
    if do_pool:
        scratch.append(pltpu.VMEM((L, Cout), jnp.float32))   # pre-pool result

    vec = pl.BlockSpec((1, Cout), lambda i: (0, 0))
    return pl.pallas_call(
        partial(_conv_pair_kernel, ksize=K, do_pool=do_pool),
        out_shape=jax.ShapeDtypeStruct((B, Lout, Cout), jnp.float32),
        grid=(B,),
        in_specs=[pl.BlockSpec((1, L, Cin), lambda i: (i, 0, 0)),
                  pl.BlockSpec(bp["w1"].shape, lambda i: (0, 0)),
                  vec, vec, vec,
                  pl.BlockSpec(bp["w2"].shape, lambda i: (0, 0)),
                  vec, vec, vec],
        out_specs=pl.BlockSpec((1, Lout, Cout), lambda i: (i, 0, 0)),
        scratch_shapes=scratch,
        compiler_params=pltpu.CompilerParams(dimension_semantics=("parallel",)),
    )(x, bp["w1"], bp["b1"], bp["g1"], bp["be1"],
      bp["w2"], bp["b2"], bp["g2"], bp["be2"])


# ---------------------------------------------------------------------------
# Kernel 2: an entire MambaBlock chain + fused encoder ChannelLayerNorm.
#   Grid = (batch, layer).  The activation stays resident in VMEM across the
#   "arbitrary" layer axis (constant output block index); per-layer weights
#   are streamed.  Per layer:
#     LN -> fused in_proj (x|z) -> causal depthwise conv + SiLU ->
#     fused x_proj (dt|B|C) -> dt_proj + softplus -> vectorized coefficient
#     precompute -> serial selective scan (contiguous per-step loads, y
#     accumulated in-loop) -> SiLU gate -> out_proj -> residual add.
#   Last layer additionally emits Encoder.lns[i](res) (+ LeakyReLU).
# ---------------------------------------------------------------------------
_MAMBA_PARAM_ORDER = ("g_ln", "b_ln", "w_in", "wconv", "bconv",
                      "w_x", "wdt", "bdt", "alogT", "dpar", "wout")


def _mamba_chain_kernel(x_ref, gln_ref, bln_ref, win_ref, wconv_ref, bconv_ref,
                        wx_ref, wdt_ref, bdt_ref, alogT_ref, dpar_ref, wout_ref,
                        genc_ref, benc_ref,
                        ores_ref, oln_ref,
                        xconv_sc, da_sc, dbx_sc, c_sc, y_sc,
                        *, d_state, d_conv, apply_act, unroll):
    N, dc = d_state, d_conv
    L = x_ref.shape[1]
    E = win_ref.shape[2] // 2
    Rp = wdt_ref.shape[1]

    j = pl.program_id(1)
    last = pl.num_programs(1) - 1

    # Layer 0 seeds the VMEM-resident activation; later layers update in place.
    @pl.when(j == 0)
    def _():
        ores_ref[0] = x_ref[0]

    x = ores_ref[0]                                      # (L, D) f32 residual input

    # --- MambaBlock ChannelLayerNorm (f32 statistics) ---
    u = _ln(x, gln_ref[0], bln_ref[0])

    # --- fused in_proj: [x | z] in one matmul ---
    xz = jnp.dot(u.astype(jnp.bfloat16), win_ref[0],
                 preferred_element_type=jnp.float32)     # (L, 2E)
    xi = xz[:, 0:E]
    z = xz[:, E:2 * E]

    # --- causal depthwise conv (left pad dc-1, 8-row aligned) + SiLU ---
    xconv_sc[0:LEAD, :] = jnp.zeros((LEAD, E), jnp.float32)
    xconv_sc[LEAD:LEAD + L, :] = xi
    base = LEAD - (dc - 1)
    wconv = wconv_ref[0]                                 # (dc, E)
    acc = jnp.zeros((L, E), jnp.float32)
    for k in range(dc):                                  # static unroll over taps
        acc = acc + wconv[k:k + 1, :] * xconv_sc[base + k:base + k + L, :]
    xc = _silu(acc + bconv_ref[0])                       # (L, E)

    # --- fused x_proj: [dt | B | C] in one matmul ---
    xp = jnp.dot(xc.astype(jnp.bfloat16), wx_ref[0],
                 preferred_element_type=jnp.float32)     # (L, Rp + 2N)
    dt_low = xp[:, 0:Rp]

    delta = _softplus(
        jnp.dot(dt_low.astype(jnp.bfloat16), wdt_ref[0],
                preferred_element_type=jnp.float32) + bdt_ref[0])   # (L, E)

    # --- scan coefficients, TIME-MAJOR (row = t*N + n), fully vectorized ---
    # Exact 0/1 row-replication / state-selection matrices built from f32
    # iotas (no int div/mod) drive the relayout on the MXU, so the serial loop
    # below only ever loads contiguous (N, E) tiles.
    A = -jnp.exp(alogT_ref[0])                           # (N, E)
    g = delta * xc                                       # (L, E)

    r_i = lax.broadcasted_iota(jnp.int32, (L * N, L), 0).astype(jnp.float32)
    c_i = lax.broadcasted_iota(jnp.int32, (L * N, L), 1).astype(jnp.float32)
    d = r_i - float(N) * c_i
    rep_m = jnp.where((d >= 0.0) & (d < float(N)), 1.0, 0.0)   # row t*N+n -> row t
    t_of_r = jnp.sum(rep_m * c_i, axis=1, keepdims=True)       # (L*N, 1) == t
    n_of_r = r_i[:, 0:1] - float(N) * t_of_r                   # (L*N, 1) == n
    m_i = lax.broadcasted_iota(jnp.int32, (L * N, N), 1).astype(jnp.float32)
    sel_m = jnp.where(n_of_r == m_i, 1.0, 0.0)                 # row t*N+n -> state n

    delta_rep = jnp.dot(rep_m, delta, preferred_element_type=jnp.float32)
    g_rep = jnp.dot(rep_m, g, preferred_element_type=jnp.float32)
    bc_rep = jnp.dot(rep_m, xp[:, Rp:Rp + 2 * N],
                     preferred_element_type=jnp.float32)       # (L*N, 2N)
    b_sel = jnp.sum(bc_rep[:, 0:N] * sel_m, axis=1, keepdims=True)      # B[t,n]
    c_sel = jnp.sum(bc_rep[:, N:2 * N] * sel_m, axis=1, keepdims=True)  # C[t,n]
    a_rep = jnp.dot(sel_m, A, preferred_element_type=jnp.float32)       # A[n,:]

    da_sc[...] = jnp.exp(delta_rep * a_rep)              # one vectorized exp
    dbx_sc[...] = b_sel * g_rep
    c_sc[...] = c_sel

    # --- serial selective scan: h (N, E) in registers, f32 recurrence;
    #     contiguous (N, E) coefficient loads; y_t accumulated in-loop
    #     (no h history buffer). ---
    def scan_body(t, h):
        b0 = pl.multiple_of(t * N, N)                    # true for any N
        h = da_sc[pl.ds(b0, N), :] * h + dbx_sc[pl.ds(b0, N), :]
        y_t = jnp.sum(c_sc[pl.ds(b0, N), :] * h, axis=0, keepdims=True)
        y_sc[pl.ds(t, 1), :] = y_t
        return h

    lax.fori_loop(0, L, scan_body, jnp.zeros((N, E), jnp.float32),
                  unroll=unroll)

    # --- D skip, gate, out_proj, Mamba residual add ---
    y = dpar_ref[0] * xc + y_sc[...]
    y = y * _silu(z)
    out = jnp.dot(y.astype(jnp.bfloat16), wout_ref[0],
                  preferred_element_type=jnp.float32)    # (L, D)
    res = x + out
    ores_ref[0] = res

    # --- fused Encoder.lns[i] (+ LeakyReLU) epilogue on the last layer ---
    @pl.when(j == last)
    def _():
        yl = _ln(res, genc_ref[...], benc_ref[...])
        if apply_act:
            yl = _lrelu(yl)
        oln_ref[0] = yl


def mamba_chain(x, sp, g_enc, be_enc, *, d_state, d_conv, apply_act, unroll=4):
    B, L, D = x.shape
    nl = sp["w_in"].shape[0]
    E = sp["w_in"].shape[2] // 2
    N = d_state
    assert d_conv - 1 <= LEAD, "causal-conv pad buffer assumes d_conv-1 <= LEAD"

    params = [sp[k] for k in _MAMBA_PARAM_ORDER] + [g_enc, be_enc]

    in_specs = [pl.BlockSpec((1, L, D), lambda i, j: (i, 0, 0))]
    for a in params[:-2]:                                # stacked per-layer (3D)
        in_specs.append(pl.BlockSpec((1,) + a.shape[1:], lambda i, j: (j, 0, 0)))
    in_specs += [pl.BlockSpec((1, D), lambda i, j: (0, 0)),
                 pl.BlockSpec((1, D), lambda i, j: (0, 0))]

    out_shape = (jax.ShapeDtypeStruct((B, L, D), jnp.float32),   # block residual out
                 jax.ShapeDtypeStruct((B, L, D), jnp.float32))   # encoder LN(+act) out
    out_specs = (pl.BlockSpec((1, L, D), lambda i, j: (i, 0, 0)),
                 pl.BlockSpec((1, L, D), lambda i, j: (i, 0, 0)))

    scratch = [
        pltpu.VMEM((LEAD + L, E), jnp.float32),          # causal-conv pad buffer
        pltpu.VMEM((L * N, E), jnp.float32),             # exp(delta*A), time-major
        pltpu.VMEM((L * N, E), jnp.float32),             # delta*B*x,   time-major
        pltpu.VMEM((L * N, 1), jnp.float32),             # C[t,n],      time-major
        pltpu.VMEM((L, E), jnp.float32),                 # per-step SSM output y_t
    ]

    return pl.pallas_call(
        partial(_mamba_chain_kernel, d_state=d_state, d_conv=d_conv,
                apply_act=apply_act, unroll=unroll),
        out_shape=out_shape,
        grid=(B, nl),
        in_specs=in_specs,
        out_specs=out_specs,
        scratch_shapes=scratch,
        compiler_params=pltpu.CompilerParams(
            dimension_semantics=("parallel", "arbitrary")),
    )(x, *params)


# ---------------------------------------------------------------------------
# Module wrappers (glue)
# ---------------------------------------------------------------------------
def conv_block_forward(x, bp, d_state, d_conv, apply_act):
    h = conv_pair(x, bp)
    res, nxt = mamba_chain(h, bp["mamba"], bp["g_enc"], bp["be_enc"],
                           d_state=d_state, d_conv=d_conv, apply_act=apply_act)
    return res, nxt


def encoder_forward(x, params, cfg):
    d_state = cfg["mamba"]["d_state"]
    d_conv = cfg["mamba"]["d_conv"]
    blocks = params["blocks"]
    residuals = []
    nb = len(blocks)
    for i, bp in enumerate(blocks):
        if i == 0:
            # first conv has Cin=1; zero-pad channels to 8 (weights were padded
            # to match) so the MXU contraction dim is >= 8.
            x = jnp.pad(x, ((0, 0), (0, 0), (0, bp["cin_pad"] - x.shape[2])))
        res, x = conv_block_forward(x, bp, d_state, d_conv,
                                    apply_act=(i < nb - 1))
        residuals.append(res)
    return x, residuals[:-1][::-1]


# ---------------------------------------------------------------------------
# Deterministic synthetic parameter init (shapes per Encoder.__init__ / Mamba),
# pre-fused / pre-cast / layer-stacked for the kernels above.
# ---------------------------------------------------------------------------
def init_params(key, cfg):
    in_dims = (1, 32, 64, 128, 256)
    out_dims = (32, 64, 128, 256, 256)
    kernel_sizes = (4, 4, 4, 4, 3)
    num_mambas = (2, 2, 2, 2, 3)
    bottlenecks = (False, False, False, False, True)
    d_state = cfg["mamba"]["d_state"]
    d_conv = cfg["mamba"]["d_conv"]
    expand = cfg["mamba"]["expand"]

    def conv_weight(k, K, cin, cin_p, cout):
        w = 0.05 * jax.random.normal(k, (K, cin, cout), jnp.float32)
        wp = jnp.zeros((K, cin_p, cout), jnp.float32).at[:, :cin, :].set(w)
        return wp.reshape(K * cin_p, cout).astype(jnp.bfloat16)   # im2col flatten

    blocks = []
    for i in range(len(in_dims)):
        cin, cout, K = in_dims[i], out_dims[i], kernel_sizes[i]
        cin_p = max(cin, 8)
        key, k1, k2, k3, k4 = jax.random.split(key, 5)
        D = cout
        E = expand * D
        R = math.ceil(D / 16)            # mamba dt_rank
        Rp = max(R, 8)                   # zero-padded for MXU-friendly contraction

        layers = []
        for _ in range(num_mambas[i]):
            key, *mk = jax.random.split(key, 11)
            winx = 0.05 * jax.random.normal(mk[0], (D, E), jnp.float32)
            winz = 0.05 * jax.random.normal(mk[1], (D, E), jnp.float32)
            wdtin = jnp.zeros((E, Rp), jnp.float32).at[:, :R].set(
                0.05 * jax.random.normal(mk[2], (E, R), jnp.float32))
            wb = 0.05 * jax.random.normal(mk[3], (E, d_state), jnp.float32)
            wc = 0.05 * jax.random.normal(mk[4], (E, d_state), jnp.float32)
            wdt = jnp.zeros((Rp, E), jnp.float32).at[:R, :].set(
                0.05 * jax.random.normal(mk[5], (R, E), jnp.float32))
            layers.append(dict(
                g_ln=jnp.ones((1, D), jnp.float32),
                b_ln=jnp.zeros((1, D), jnp.float32),
                w_in=jnp.concatenate([winx, winz], axis=1).astype(jnp.bfloat16),
                wconv=0.2 * jax.random.normal(mk[6], (d_conv, E), jnp.float32),
                bconv=0.01 * jax.random.normal(mk[7], (1, E), jnp.float32),
                w_x=jnp.concatenate([wdtin, wb, wc], axis=1).astype(jnp.bfloat16),
                wdt=wdt.astype(jnp.bfloat16),
                bdt=0.01 * jax.random.normal(mk[8], (1, E), jnp.float32),
                alogT=(jnp.log(jnp.arange(1, d_state + 1, dtype=jnp.float32))[:, None]
                       * jnp.ones((1, E), jnp.float32)),
                dpar=jnp.ones((1, E), jnp.float32),
                wout=(0.05 * jax.random.normal(mk[9], (E, D),
                                               jnp.float32)).astype(jnp.bfloat16),
            ))
        stacked = {k: jnp.stack([lp[k] for lp in layers], axis=0)
                   for k in _MAMBA_PARAM_ORDER}

        blocks.append(dict(
            ksize=K, bottleneck=bottlenecks[i], cin_pad=cin_p,
            w1=conv_weight(k1, K, cin, cin_p, cout),
            b1=0.01 * jax.random.normal(k2, (1, cout), jnp.float32),
            g1=jnp.ones((1, cout), jnp.float32),
            be1=jnp.zeros((1, cout), jnp.float32),
            w2=conv_weight(k3, K, cout, cout, cout),
            b2=0.01 * jax.random.normal(k4, (1, cout), jnp.float32),
            g2=jnp.ones((1, cout), jnp.float32),
            be2=jnp.zeros((1, cout), jnp.float32),
            g_enc=jnp.ones((1, cout), jnp.float32),
            be_enc=jnp.zeros((1, cout), jnp.float32),
            mamba=stacked,
        ))
    return {"blocks": blocks}


if __name__ == "__main__":
    cfg = {"mamba": {"d_state": 8, "d_conv": 4, "expand": 2}}
    key = jax.random.PRNGKey(0)
    pkey, xkey = jax.random.split(key)
    params = init_params(pkey, cfg)

    B, L = 2, 64
    # layout (B, L, C): equivalent to a torch input of shape (B, 1, L)
    x = jax.random.normal(xkey, (B, L, 1), jnp.float32)

    out, residuals = encoder_forward(x, params, cfg)
    out = jax.block_until_ready(out)
    residuals = [jax.block_until_ready(r) for r in residuals]

    # shape checks (ours (B, L', C) == torch (B, C, L'))
    assert out.shape == (B, L // 16, 256), out.shape
    expected = [(B, L // 16, 256), (B, L // 8, 128), (B, L // 4, 64), (B, L // 2, 32)]
    assert [r.shape for r in residuals] == expected, [r.shape for r in residuals]
    assert bool(jnp.all(jnp.isfinite(out)))

    print("KERNEL_OK")
</pallas_src>

<mosaic_0001>
module attributes {stable_mosaic.version = 11 : i64} {
  func.func @_conv_pair_kernel(%arg0: i32, %arg1: memref<1x64x8xf32, #tpu.memory_space<vmem>>, %arg2: memref<32x32xbf16, #tpu.memory_space<vmem>>, %arg3: memref<1x32xf32, #tpu.memory_space<vmem>>, %arg4: memref<1x32xf32, #tpu.memory_space<vmem>>, %arg5: memref<1x32xf32, #tpu.memory_space<vmem>>, %arg6: memref<128x32xbf16, #tpu.memory_space<vmem>>, %arg7: memref<1x32xf32, #tpu.memory_space<vmem>>, %arg8: memref<1x32xf32, #tpu.memory_space<vmem>>, %arg9: memref<1x32xf32, #tpu.memory_space<vmem>>, %arg10: memref<1x32x32xf32, #tpu.memory_space<vmem>>, %arg11: memref<72x8xbf16, #tpu.memory_space<vmem>>, %arg12: memref<64x32xbf16, #tpu.memory_space<vmem>>, %arg13: memref<72x32xbf16, #tpu.memory_space<vmem>>, %arg14: memref<64x128xbf16, #tpu.memory_space<vmem>>, %arg15: memref<64x32xf32, #tpu.memory_space<vmem>>) attributes {dimension_semantics = [#tpu.dimension_semantics<parallel>], iteration_bounds = array<i64: 2>, scalar_prefetch = 0 : i64, scratch_operands = 5 : i64, tpu.core_type = #tpu.core_type<tc>, window_params = [{transform_indices = @transform_0, window_bounds = array<i64: 1, 64, 8>}, {pipeline_mode = #tpu.pipeline_mode<synchronous>, transform_indices = @transform_1, window_bounds = array<i64: 32, 32>}, {pipeline_mode = #tpu.pipeline_mode<synchronous>, transform_indices = @transform_2, window_bounds = array<i64: 1, 32>}, {pipeline_mode = #tpu.pipeline_mode<synchronous>, transform_indices = @transform_3, window_bounds = array<i64: 1, 32>}, {pipeline_mode = #tpu.pipeline_mode<synchronous>, transform_indices = @transform_4, window_bounds = array<i64: 1, 32>}, {pipeline_mode = #tpu.pipeline_mode<synchronous>, transform_indices = @transform_5, window_bounds = array<i64: 128, 32>}, {pipeline_mode = #tpu.pipeline_mode<synchronous>, transform_indices = @transform_6, window_bounds = array<i64: 1, 32>}, {pipeline_mode = #tpu.pipeline_mode<synchronous>, transform_indices = @transform_7, window_bounds = array<i64: 1, 32>}, {pipeline_mode = #tpu.pipeline_mode<synchronous>, transform_indices = @transform_8, window_bounds = array<i64: 1, 32>}, {transform_indices = @transform_9, window_bounds = array<i64: 1, 32, 32>}]} {
    %c0 = arith.constant 0 : index
    %c0_0 = arith.constant 0 : index
    %c0_1 = arith.constant 0 : index
    %0 = vector.load %arg1[%c0, %c0_0, %c0_1] : memref<1x64x8xf32, #tpu.memory_space<vmem>>, vector<1x64x8xf32>
    %1 = vector.shape_cast %0 : vector<1x64x8xf32> to vector<64x8xf32>
    %2 = arith.truncf %1 : vector<64x8xf32> to vector<64x8xbf16>
    %c0_2 = arith.constant 0 : index
    %c0_3 = arith.constant 0 : index
    %3 = vector.load %arg11[%c0_2, %c0_3] : memref<72x8xbf16, #tpu.memory_space<vmem>>, vector<64x8xbf16>
    tpu.vector_store %arg11[%c0_2, %c0_3], %2 {strides = array<i32>} : memref<72x8xbf16, #tpu.memory_space<vmem>>, vector<64x8xbf16>,
    %cst = arith.constant 0.000000e+00 : bf16
    %4 = vector.broadcast %cst : bf16 to vector<8x8xbf16>
    %c64 = arith.constant 64 : index
    %c0_4 = arith.constant 0 : index
    %5 = vector.load %arg11[%c64, %c0_4] : memref<72x8xbf16, #tpu.memory_space<vmem>>, vector<8x8xbf16>
    tpu.vector_store %arg11[%c64, %c0_4], %4 {strides = array<i32>} : memref<72x8xbf16, #tpu.memory_space<vmem>>, vector<8x8xbf16>,
    %c0_5 = arith.constant 0 : index
    %c0_6 = arith.constant 0 : index
    %6 = vector.load %arg11[%c0_5, %c0_6] : memref<72x8xbf16, #tpu.memory_space<vmem>>, vector<64x8xbf16>
    %c0_7 = arith.constant 0 : index
    %c0_8 = arith.constant 0 : index
    %7 = vector.load %arg12[%c0_7, %c0_8] : memref<64x32xbf16, #tpu.memory_space<vmem>>, vector<64x8xbf16>
    tpu.vector_store %arg12[%c0_7, %c0_8], %6 {strides = array<i32>} : memref<64x32xbf16, #tpu.memory_space<vmem>>, vector<64x8xbf16>,
    %c1 = arith.constant 1 : index
    %c0_9 = arith.constant 0 : index
    %8 = vector.load %arg11[%c1, %c0_9] : memref<72x8xbf16, #tpu.memory_space<vmem>>, vector<64x8xbf16>
    %c0_10 = arith.constant 0 : index
    %c8 = arith.constant 8 : index
    %9 = vector.load %arg12[%c0_10, %c8] : memref<64x32xbf16, #tpu.memory_space<vmem>>, vector<64x8xbf16>
    tpu.vector_store %arg12[%c0_10, %c8], %8 {strides = array<i32>} : memref<64x32xbf16, #tpu.memory_space<vmem>>, vector<64x8xbf16>,
    %c2 = arith.constant 2 : index
    %c0_11 = arith.constant 0 : index
    %10 = vector.load %arg11[%c2, %c0_11] : memref<72x8xbf16, #tpu.memory_space<vmem>>, vector<64x8xbf16>
    %c0_12 = arith.constant 0 : index
    %c16 = arith.constant 16 : index
    %11 = vector.load %arg12[%c0_12, %c16] : memref<64x32xbf16, #tpu.memory_space<vmem>>, vector<64x8xbf16>
    tpu.vector_store %arg12[%c0_12, %c16], %10 {strides = array<i32>} : memref<64x32xbf16, #tpu.memory_space<vmem>>, vector<64x8xbf16>,
    %c3 = arith.constant 3 : index
    %c0_13 = arith.constant 0 : index
    %12 = vector.load %arg11[%c3, %c0_13] : memref<72x8xbf16, #tpu.memory_space<vmem>>, vector<64x8xbf16>
    %c0_14 = arith.constant 0 : index
    %c24 = arith.constant 24 : index
    %13 = vector.load %arg12[%c0_14, %c24] : memref<64x32xbf16, #tpu.memory_space<vmem>>, vector<64x8xbf16>
    tpu.vector_store %arg12[%c0_14, %c24], %12 {strides = array<i32>} : memref<64x32xbf16, #tpu.memory_space<vmem>>, vector<64x8xbf16>,
    %c0_15 = arith.constant 0 : index
    %c0_16 = arith.constant 0 : index
    %14 = vector.load %arg12[%c0_15, %c0_16] : memref<64x32xbf16, #tpu.memory_space<vmem>>, vector<64x32xbf16>
    %c0_17 = arith.constant 0 : index
    %c0_18 = arith.constant 0 : index
    %15 = vector.load %arg2[%c0_17, %c0_18] : memref<32x32xbf16, #tpu.memory_space<vmem>>, vector<32x32xbf16>
    %cst_19 = arith.constant dense<0.000000e+00> : vector<64x32xf32>
    %16 = tpu.matmul %14, %15, %cst_19 {dimension_numbers = #tpu.dot_dimension_numbers<[1], [0], [0], [1], [0, 0, 1, 1], [], []>} : vector<64x32xbf16>, vector<32x32xbf16>, vector<64x32xf32> -> vector<64x32xf32>
    %c0_20 = arith.constant 0 : index
    %c0_21 = arith.constant 0 : index
    %17 = vector.load %arg3[%c0_20, %c0_21] : memref<1x32xf32, #tpu.memory_space<vmem>>, vector<1x32xf32>
    %18 = vector.broadcast %17 : vector<1x32xf32> to vector<64x32xf32>
    %19 = arith.addf %16, %18 : vector<64x32xf32>
    %c0_22 = arith.constant 0 : index
    %c0_23 = arith.constant 0 : index
    %20 = vector.load %arg4[%c0_22, %c0_23] : memref<1x32xf32, #tpu.memory_space<vmem>>, vector<1x32xf32>
    %c0_24 = arith.constant 0 : index
    %c0_25 = arith.constant 0 : index
    %21 = vector.load %arg5[%c0_24, %c0_25] : memref<1x32xf32, #tpu.memory_space<vmem>>, vector<1x32xf32>
    %cst_26 = arith.constant dense<0.000000e+00> : vector<64xf32>
    %22 = vector.multi_reduction <add>, %19, %cst_26 [1] : vector<64x32xf32> to vector<64xf32>
    %23 = vector.shape_cast %22 : vector<64xf32> to vector<64x1xf32>
    %cst_27 = arith.constant 3.200000e+01 : f32
    %24 = vector.broadcast %cst_27 : f32 to vector<64x1xf32>
    %25 = arith.divf %23, %24 : vector<64x1xf32>
    %26 = vector.broadcast %25 : vector<64x1xf32> to vector<64x32xf32>
    %27 = arith.subf %19, %26 : vector<64x32xf32>
    %28 = arith.mulf %27, %27 : vector<64x32xf32>
    %cst_28 = arith.constant dense<0.000000e+00> : vector<64xf32>
    %29 = vector.multi_reduction <add>, %28, %cst_28 [1] : vector<64x32xf32> to vector<64xf32>
    %30 = vector.shape_cast %29 : vector<64xf32> to vector<64x1xf32>
    %cst_29 = arith.constant 3.200000e+01 : f32
    %31 = vector.broadcast %cst_29 : f32 to vector<64x1xf32>
    %32 = arith.divf %30, %31 : vector<64x1xf32>
    %33 = vector.broadcast %25 : vector<64x1xf32> to vector<64x32xf32>
    %34 = arith.subf %19, %33 : vector<64x32xf32>
    %cst_30 = arith.constant 9.99999974E-6 : f32
    %35 = vector.broadcast %cst_30 : f32 to vector<64x1xf32>
    %36 = arith.addf %32, %35 : vector<64x1xf32>
    %37 = math.rsqrt %36 : vector<64x1xf32>
    %38 = vector.broadcast %37 : vector<64x1xf32> to vector<64x32xf32>
    %39 = arith.mulf %34, %38 : vector<64x32xf32>
    %40 = vector.broadcast %20 : vector<1x32xf32> to vector<64x32xf32>
    %41 = arith.mulf %39, %40 : vector<64x32xf32>
    %42 = vector.broadcast %21 : vector<1x32xf32> to vector<64x32xf32>
    %43 = arith.addf %41, %42 : vector<64x32xf32>
    %cst_31 = arith.constant 0.000000e+00 : f32
    %44 = vector.broadcast %cst_31 : f32 to vector<64x32xf32>
    %45 = arith.cmpf oge, %43, %44 : vector<64x32xf32>
    %cst_32 = arith.constant 1.000000e-01 : f32
    %46 = vector.broadcast %cst_32 : f32 to vector<64x32xf32>
    %47 = arith.mulf %46, %43 : vector<64x32xf32>
    %48 = arith.select %45, %43, %47 : vector<64x32xi1>, vector<64x32xf32>
    %49 = arith.truncf %48 : vector<64x32xf32> to vector<64x32xbf16>
    %c0_33 = arith.constant 0 : index
    %c0_34 = arith.constant 0 : index
    %50 = vector.load %arg13[%c0_33, %c0_34] : memref<72x32xbf16, #tpu.memory_space<vmem>>, vector<64x32xbf16>
    tpu.vector_store %arg13[%c0_33, %c0_34], %49 {strides = array<i32>} : memref<72x32xbf16, #tpu.memory_space<vmem>>, vector<64x32xbf16>,
    %cst_35 = arith.constant 0.000000e+00 : bf16
    %51 = vector.broadcast %cst_35 : bf16 to vector<8x32xbf16>
    %c64_36 = arith.constant 64 : index
    %c0_37 = arith.constant 0 : index
    %52 = vector.load %arg13[%c64_36, %c0_37] : memref<72x32xbf16, #tpu.memory_space<vmem>>, vector<8x32xbf16>
    tpu.vector_store %arg13[%c64_36, %c0_37], %51 {strides = array<i32>} : memref<72x32xbf16, #tpu.memory_space<vmem>>, vector<8x32xbf16>,
    %c0_38 = arith.constant 0 : index
    %c0_39 = arith.constant 0 : index
    %53 = vector.load %arg13[%c0_38, %c0_39] : memref<72x32xbf16, #tpu.memory_space<vmem>>, vector<64x32xbf16>
    %c0_40 = arith.constant 0 : index
    %c0_41 = arith.constant 0 : index
    %54 = vector.load %arg14[%c0_40, %c0_41] : memref<64x128xbf16, #tpu.memory_space<vmem>>, vector<64x32xbf16>
    tpu.vector_store %arg14[%c0_40, %c0_41], %53 {strides = array<i32>} : memref<64x128xbf16, #tpu.memory_space<vmem>>, vector<64x32xbf16>,
    %c1_42 = arith.constant 1 : index
    %c0_43 = arith.constant 0 : index
    %55 = vector.load %arg13[%c1_42, %c0_43] : memref<72x32xbf16, #tpu.memory_space<vmem>>, vector<64x32xbf16>
    %c0_44 = arith.constant 0 : index
    %c32 = arith.constant 32 : index
    %56 = vector.load %arg14[%c0_44, %c32] : memref<64x128xbf16, #tpu.memory_space<vmem>>, vector<64x32xbf16>
    tpu.vector_store %arg14[%c0_44, %c32], %55 {strides = array<i32>} : memref<64x128xbf16, #tpu.memory_space<vmem>>, vector<64x32xbf16>,
    %c2_45 = arith.constant 2 : index
    %c0_46 = arith.constant 0 : index
    %57 = vector.load %arg13[%c2_45, %c0_46] : memref<72x32xbf16, #tpu.memory_space<vmem>>, vector<64x32xbf16>
    %c0_47 = arith.constant 0 : index
    %c64_48 = arith.constant 64 : index
    %58 = vector.load %arg14[%c0_47, %c64_48] : memref<64x128xbf16, #tpu.memory_space<vmem>>, vector<64x32xbf16>
    tpu.vector_store %arg14[%c0_47, %c64_48], %57 {strides = array<i32>} : memref<64x128xbf16, #tpu.memory_space<vmem>>, vector<64x32xbf16>,
    %c3_49 = arith.constant 3 : index
    %c0_50 = arith.constant 0 : index
    %59 = vector.load %arg13[%c3_49, %c0_50] : memref<72x32xbf16, #tpu.memory_space<vmem>>, vector<64x32xbf16>
    %c0_51 = arith.constant 0 : index
    %c96 = arith.constant 96 : index
    %60 = vector.load %arg14[%c0_51, %c96] : memref<64x128xbf16, #tpu.memory_space<vmem>>, vector<64x32xbf16>
    tpu.vector_store %arg14[%c0_51, %c96], %59 {strides = array<i32>} : memref<64x128xbf16, #tpu.memory_space<vmem>>, vector<64x32xbf16>,
    %c0_52 = arith.constant 0 : index
    %c0_53 = arith.constant 0 : index
    %61 = vector.load %arg14[%c0_52, %c0_53] : memref<64x128xbf16, #tpu.memory_space<vmem>>, vector<64x128xbf16>
    %c0_54 = arith.constant 0 : index
    %c0_55 = arith.constant 0 : index
    %62 = vector.load %arg6[%c0_54, %c0_55] : memref<128x32xbf16, #tpu.memory_space<vmem>>, vector<128x32xbf16>
    %cst_56 = arith.constant dense<0.000000e+00> : vector<64x32xf32>
    %63 = tpu.matmul %61, %62, %cst_56 {dimension_numbers = #tpu.dot_dimension_numbers<[1], [0], [0], [1], [0, 0, 1, 1], [], []>} : vector<64x128xbf16>, vector<128x32xbf16>, vector<64x32xf32> -> vector<64x32xf32>
    %c0_57 = arith.constant 0 : index
    %c0_58 = arith.constant 0 : index
    %64 = vector.load %arg7[%c0_57, %c0_58] : memref<1x32xf32, #tpu.memory_space<vmem>>, vector<1x32xf32>
    %65 = vector.broadcast %64 : vector<1x32xf32> to vector<64x32xf32>
    %66 = arith.addf %63, %65 : vector<64x32xf32>
    %c0_59 = arith.constant 0 : index
    %c0_60 = arith.constant 0 : index
    %67 = vector.load %arg8[%c0_59, %c0_60] : memref<1x32xf32, #tpu.memory_space<vmem>>, vector<1x32xf32>
    %c0_61 = arith.constant 0 : index
    %c0_62 = arith.constant 0 : index
    %68 = vector.load %arg9[%c0_61, %c0_62] : memref<1x32xf32, #tpu.memory_space<vmem>>, vector<1x32xf32>
    %cst_63 = arith.constant dense<0.000000e+00> : vector<64xf32>
    %69 = vector.multi_reduction <add>, %66, %cst_63 [1] : vector<64x32xf32> to vector<64xf32>
    %70 = vector.shape_cast %69 : vector<64xf32> to vector<64x1xf32>
    %cst_64 = arith.constant 3.200000e+01 : f32
    %71 = vector.broadcast %cst_64 : f32 to vector<64x1xf32>
    %72 = arith.divf %70, %71 : vector<64x1xf32>
    %73 = vector.broadcast %72 : vector<64x1xf32> to vector<64x32xf32>
    %74 = arith.subf %66, %73 : vector<64x32xf32>
    %75 = arith.mulf %74, %74 : vector<64x32xf32>
    %cst_65 = arith.constant dense<0.000000e+00> : vector<64xf32>
    %76 = vector.multi_reduction <add>, %75, %cst_65 [1] : vector<64x32xf32> to vector<64xf32>
    %77 = vector.shape_cast %76 : vector<64xf32> to vector<64x1xf32>
    %cst_66 = arith.constant 3.200000e+01 : f32
    %78 = vector.broadcast %cst_66 : f32 to vector<64x1xf32>
    %79 = arith.divf %77, %78 : vector<64x1xf32>
    %80 = vector.broadcast %72 : vector<64x1xf32> to vector<64x32xf32>
    %81 = arith.subf %66, %80 : vector<64x32xf32>
    %cst_67 = arith.constant 9.99999974E-6 : f32
    %82 = vector.broadcast %cst_67 : f32 to vector<64x1xf32>
    %83 = arith.addf %79, %82 : vector<64x1xf32>
    %84 = math.rsqrt %83 : vector<64x1xf32>
    %85 = vector.broadcast %84 : vector<64x1xf32> to vector<64x32xf32>
    %86 = arith.mulf %81, %85 : vector<64x32xf32>
    %87 = vector.broadcast %67 : vector<1x32xf32> to vector<64x32xf32>
    %88 = arith.mulf %86, %87 : vector<64x32xf32>
    %89 = vector.broadcast %68 : vector<1x32xf32> to vector<64x32xf32>
    %90 = arith.addf %88, %89 : vector<64x32xf32>
    %cst_68 = arith.constant 0.000000e+00 : f32
    %91 = vector.broadcast %cst_68 : f32 to vector<64x32xf32>
    %92 = arith.cmpf oge, %90, %91 : vector<64x32xf32>
    %cst_69 = arith.constant 1.000000e-01 : f32
    %93 = vector.broadcast %cst_69 : f32 to vector<64x32xf32>
    %94 = arith.mulf %93, %90 : vector<64x32xf32>
    %95 = arith.select %92, %90, %94 : vector<64x32xi1>, vector<64x32xf32>
    %96 = arith.addf %48, %95 : vector<64x32xf32>
    %c0_70 = arith.constant 0 : index
    %c0_71 = arith.constant 0 : index
    %97 = vector.load %arg15[%c0_70, %c0_71] : memref<64x32xf32, #tpu.memory_space<vmem>>, vector<64x32xf32>
    tpu.vector_store %arg15[%c0_70, %c0_71], %96 {strides = array<i32>} : memref<64x32xf32, #tpu.memory_space<vmem>>, vector<64x32xf32>,
    %c0_72 = arith.constant 0 : index
    %c0_73 = arith.constant 0 : index
    %98 = tpu.strided_load %arg15[%c0_72, %c0_73] {strides = array<i32: 2, 1>} : memref<64x32xf32, #tpu.memory_space<vmem>>, vector<32x32xf32>
    %c1_74 = arith.constant 1 : index
    %c0_75 = arith.constant 0 : index
    %99 = tpu.strided_load %arg15[%c1_74, %c0_75] {strides = array<i32: 2, 1>} : memref<64x32xf32, #tpu.memory_space<vmem>>, vector<32x32xf32>
    %100 = arith.addf %98, %99 : vector<32x32xf32>
    %cst_76 = arith.constant 5.000000e-01 : f32
    %101 = vector.broadcast %cst_76 : f32 to vector<32x32xf32>
    %102 = arith.mulf %101, %100 : vector<32x32xf32>
    %c0_77 = arith.constant 0 : index
    %c0_78 = arith.constant 0 : index
    %c0_79 = arith.constant 0 : index
    %103 = vector.load %arg10[%c0_77, %c0_78, %c0_79] : memref<1x32x32xf32, #tpu.memory_space<vmem>>, vector<1x32x32xf32>
    %104 = vector.shape_cast %103 : vector<1x32x32xf32> to vector<32x32xf32>
    %105 = vector.shape_cast %102 : vector<32x32xf32> to vector<1x32x32xf32>
    tpu.vector_store %arg10[%c0_77, %c0_78, %c0_79], %105 {strides = array<i32>} : memref<1x32x32xf32, #tpu.memory_space<vmem>>, vector<1x32x32xf32>,
    return
  }
  func.func @transform_0(%arg0: i32) -> (i32, i32, i32) {
    %c0_i32 = arith.constant 0 : i32
    %c0_i32_0 = arith.constant 0 : i32
    %c0_i32_1 = arith.constant 0 : i32
    return %arg0, %c0_i32, %c0_i32_0 : i32, i32, i32
  }
  func.func @transform_1(%arg0: i32) -> (i32, i32) {
    %c0_i32 = arith.constant 0 : i32
    %c0_i32_0 = arith.constant 0 : i32
    %c0_i32_1 = arith.constant 0 : i32
    return %c0_i32, %c0_i32_0 : i32, i32
  }
  func.func @transform_2(%arg0: i32) -> (i32, i32) {
    %c0_i32 = arith.constant 0 : i32
    %c0_i32_0 = arith.constant 0 : i32
    %c0_i32_1 = arith.constant 0 : i32
    return %c0_i32, %c0_i32_0 : i32, i32
  }
  func.func @transform_3(%arg0: i32) -> (i32, i32) {
    %c0_i32 = arith.constant 0 : i32
    %c0_i32_0 = arith.constant 0 : i32
    %c0_i32_1 = arith.constant 0 : i32
    return %c0_i32, %c0_i32_0 : i32, i32
  }
  func.func @transform_4(%arg0: i32) -> (i32, i32) {
    %c0_i32 = arith.constant 0 : i32
    %c0_i32_0 = arith.constant 0 : i32
    %c0_i32_1 = arith.constant 0 : i32
    return %c0_i32, %c0_i32_0 : i32, i32
  }
  func.func @transform_5(%arg0: i32) -> (i32, i32) {
    %c0_i32 = arith.constant 0 : i32
    %c0_i32_0 = arith.constant 0 : i32
    %c0_i32_1 = arith.constant 0 : i32
    return %c0_i32, %c0_i32_0 : i32, i32
  }
  func.func @transform_6(%arg0: i32) -> (i32, i32) {
    %c0_i32 = arith.constant 0 : i32
    %c0_i32_0 = arith.constant 0 : i32
    %c0_i32_1 = arith.constant 0 : i32
    return %c0_i32, %c0_i32_0 : i32, i32
  }
  func.func @transform_7(%arg0: i32) -> (i32, i32) {
    %c0_i32 = arith.constant 0 : i32
    %c0_i32_0 = arith.constant 0 : i32
    %c0_i32_1 = arith.constant 0 : i32
    return %c0_i32, %c0_i32_0 : i32, i32
  }
  func.func @transform_8(%arg0: i32) -> (i32, i32) {
    %c0_i32 = arith.constant 0 : i32
    %c0_i32_0 = arith.constant 0 : i32
    %c0_i32_1 = arith.constant 0 : i32
    return %c0_i32, %c0_i32_0 : i32, i32
  }
  func.func @transform_9(%arg0: i32) -> (i32, i32, i32) {
    %c0_i32 = arith.constant 0 : i32
    %c0_i32_0 = arith.constant 0 : i32
    %c0_i32_1 = arith.constant 0 : i32
    return %arg0, %c0_i32, %c0_i32_0 : i32, i32, i32
  }
}

</mosaic_0001>

<bundles_post_ra>
// kernel: tpu_custom_call.1
= control target key start
LH: loop header
LB: loop body
LE: loop exit
PB: predicated region body
PF: predicated region fallthrough
CT: control target
= control target key end

     0   :  { %14 = vsyncpa [#allocation8], 0  ;;  %s2550_s0 = inlined_call_operand.vmem [shape: f32[2,64,8], index: 0, kind: input, shape index: {}]   ;;  %s2551_s1 = inlined_call_operand.vmem [shape: bf16[32,32], index: 1, kind: input, shape index: {}]   ;;  %s2552_s2 = inlined_call_operand.vmem [shape: f32[1,32], index: 2, kind: input, shape index: {}]   ;;  %s2553_s3 = inlined_call_operand.vmem [shape: f32[1,32], index: 3, kind: input, shape index: {}]   ;;  %s2554_s4 = inlined_call_operand.vmem [shape: f32[1,32], index: 4, kind: input, shape index: {}]   ;;  %s2555_s5 = inlined_call_operand.vmem [shape: bf16[128,32], index: 5, kind: input, shape index: {}]   ;;  %s2556_s6 = inlined_call_operand.vmem [shape: f32[1,32], index: 6, kind: input, shape index: {}]   ;;  %s2557_s7 = inlined_call_operand.vmem [shape: f32[1,32], index: 7, kind: input, shape index: {}]   ;;  %s2558_s8 = inlined_call_operand.vmem [shape: f32[1,32], index: 8, kind: input, shape index: {}]   ;;  %s2559_s9 = inlined_call_operand.hbm [shape: f32[2,32,32], index: 9, kind: output, shape index: {}]  }
   0x1   :  { %16 = vsyncpa [#allocation8 + $0x1], 0  ;;  %s2061_s30 = smov 0   ;;  %s2063_s10 = smov 0  }
   0x2   :  { %s2065_s11 = smov 0   ;;  %s2067_s12 = smov 0  }
   0x3 LB: > { %s2082_s13 = sadd.s32 4294967295, %s2000_s12   ;;  %s1653_s14 = sadd.s32 4294967294, %s2000_s12   ;;  %s2000_s12 = sphi %s2067_s12, %s2565_s12   ;;  %s1996_s11 = sphi %s2065_s11, %s2564_s11   ;;  %s1992_s10 = sphi %s2063_s10, %s2563_s10   ;;  %s1988_s30 = sphi %s2061_s30, %s2562_s30  }
   0x4   : > { %s2086_s15 = sadd.s32 1, %s2000_s12   ;;  %s223_s16 = sadd.s32 1, %s1996_s11 }
   0x5   : > { %s220_s17 = ssub.s32 %s2000_s12, %s2086_s15  ;;  %p233_p0 = scmp.ne.s32.totalorder %s1996_s11, %s1992_s10 }
   0x6   : > { %p221_p1 = scmp.eq.s32.totalorder %s220_s17, 0  ;;  %p234_p2 = scmp.eq.s32.totalorder %s2082_s13, 1 }
   0x7   : > { %p239_p3 = scmp.ne.s32.totalorder %s1992_s10, %s1988_s30  ;;  %p240_p4 = scmp.eq.s32.totalorder %s1653_s14, 1 }
   0x8   : > { %s2097_s18 = scalar_select %p221_p1, %s1996_s11, %s223_s16  }
   0x9   : > { %p2099_p5 = por %p234_p2, %p233_p0  ;;  %p2103_p6 = por %p240_p4, %p239_p3 }
   0xa   : > { %p1656_p7 = scmp.ge.s32.totalorder %s2000_s12, 1  ;;  %p290_p8 = scmp.lt.s32.totalorder %s2000_s12, 3 }
   0xc   : > { %p291_p9 = pnand %p1656_p7, %p290_p8 }
   0xd   : > { %p326_p10 = scmp.lt.s32.totalorder (!%p291_p9), %s2082_s13, 1  ;;  %vm372_vm0 = vcmask (!%p291_p9), 60416   ;;  %v2002_v0 = vmov (!%p291_p9), 0   ;;  %vm537_vm1 = vcmask (!%p291_p9), 1046528   ;;  %vm451_vm2 = vsmask.f32 (!%p291_p9), 7424 }
   0xe   : > { %294 = sbr.rel (%p291_p9) target bundleno = 1453 (0x5ad), region = 56  ;;  %381 = vst.msk [vmem:[#allocation2 + $0x20] sm:$0xf] (!%p291_p9), %vm372_vm0, %v2002_v0  ;;  %s2003_s26 = smov (!%p291_p9), 16   ;;  %vm596_vm3 = vsmask.f32 (!%p291_p9), 6400 }
   0xf   : > { %vm414_vm4 = vcmask (!%p291_p9), 64512   ;;  %s2004_s27 = smov (!%p291_p9), 8   ;;  %s2005_s17 = smov (!%p291_p9), 24   ;;  %vm500_vm5 = vcmask (!%p291_p9), 130112   ;;  %vm559_vm6 = vcmask (!%p291_p9), 195712   ;;  %vm653_vm7 = vcmask (!%p291_p9), 261312  }
  0x10   : > { %vm685_vm8 = vcmask (!%p291_p9), 261120   ;;  %vm954_vm9 = vcmask (!%p291_p9), 257024   ;;  %s2007_s28 = smov (!%p291_p9), 96   ;;  %s2008_s29 = smov (!%p291_p9), 32  }
  0x11   : > { %963 = vst.msk [vmem:[#allocation4 + $0x20] sm:$0xf] (!%p291_p9), %vm954_vm9, %v2002_v0  ;;  %s323_s16 = sand.u32 (!%p291_p9), 1, %s1992_s10   ;;  %s1756_s23 = sshll.u32 (!%p291_p9), %s2082_s13, 9 }
  0x15   : > { %s327_s21 = scalar_select %p326_p10, %s2082_s13, 1  ;;  %v1864_v17 = vld [vmem:[#allocation2 + $0x20] ss:$0 sps:$4 sm:$0x11]  }
  0x16   : > { %v1870_v18 = vld [vmem:[#allocation2 + $0x20] ss:$0 sps:$4 sm:$0x11]   ;;  %v545_v20 = vrot.slane %v1864_v17, 1  ;;  %s2508_s13 = scalar_lea.sflag [#allocation8], %s323_s16 }
  0x17   : > { %s1739_s22 = sshll.u32 %s327_s21, 6  ;;  %v2124_v19 = vld [vmem:[#allocation2 + $0x20] ss:$0 sps:$4 sm:$0x33]   ;;  %v484_v21 = vshll.u32 %v1870_v18, 16 }
  0x18   : > { %s330_s25 = scalar_lea.vmem %s2550_s0, %s1739_s22  ;;  %v633_v24 = vshrl.u32 %v2124_v19, 16  ;;  %v636_v25 = vshll.u32 %v2124_v19, 16  ;;  %s2006_s22 = smov 64  }
  0x19   : > { %v336_v1 = vld [vmem:[%s330_s25 + $0x20] sm:$0xff]  ;;  %v337_v2 = vld [vmem:[%s330_s25 + $0x28] sm:$0xff]  ;;  %v338_v3 = vld [vmem:[%s330_s25 + $0x30] sm:$0xff]  ;;  %v2128_v30 = vrot.slane %v484_v21, 1 }
  0x1a   : > { %v339_v4 = vld [vmem:[%s330_s25 + $0x38] sm:$0xff]  ;;  %v1744_v5 = vpack.c.bf16 %v336_v1, %v336_v1  ;;  %v1745_v6 = vpack.c.bf16 %v337_v2, %v337_v2  ;;  %v1746_v7 = vpack.c.bf16 %v338_v3, %v338_v3  ;;  %v332_v8 = vld [vmem:[%s330_s25] sm:$0xff]  ;;  %v333_v9 = vld [vmem:[%s330_s25 + $0x8] sm:$0xff]  ;;  %v638_v17 = vrot.slane %v636_v25, 2 }
  0x1b   : > { %v1747_v10 = vpack.c.bf16 %v339_v4, %v339_v4  ;;  %v334_v11 = vld [vmem:[%s330_s25 + $0x10] sm:$0xff]  ;;  %v335_v12 = vld [vmem:[%s330_s25 + $0x18] sm:$0xff]  ;;  %v1740_v13 = vpack.c.bf16 %v332_v8, %v332_v8  ;;  %v1741_v14 = vpack.c.bf16 %v333_v9, %v333_v9 }
  0x1c   : > { %377 = vst.msk [vmem:[#allocation2 + $0x10] sm:$0xf] %vm372_vm0, %v1744_v5  ;;  %378 = vst.msk [vmem:[#allocation2 + $0x14] sm:$0xf] %vm372_vm0, %v1745_v6  ;;  %v1742_v15 = vpack.c.bf16 %v334_v11, %v334_v11  ;;  %v1743_v16 = vpack.c.bf16 %v335_v12, %v335_v12 }
  0x1d   : > { %379 = vst.msk [vmem:[#allocation2 + $0x18] sm:$0xf] %vm372_vm0, %v1746_v7  ;;  %380 = vst.msk [vmem:[#allocation2 + $0x1c] sm:$0xf] %vm372_vm0, %v1747_v10 }
  0x1e   : > { %373 = vst.msk [vmem:[#allocation2] sm:$0xf] %vm372_vm0, %v1740_v13  ;;  %374 = vst.msk [vmem:[#allocation2 + $0x4] sm:$0xf] %vm372_vm0, %v1741_v14 }
  0x1f   : > { %375 = vst.msk [vmem:[#allocation2 + $0x8] sm:$0xf] %vm372_vm0, %v1742_v15  ;;  %376 = vst.msk [vmem:[#allocation2 + $0xc] sm:$0xf] %vm372_vm0, %v1743_v16  ;;  %v635_v16 = vrot.slane %v633_v24, 1 }
  0x23   : > { %v1858_v22 = vld [vmem:[#allocation2 + $0x10] sm:$0xff]  }
  0x24   : > { %v1859_v23 = vld [vmem:[#allocation2 + $0x18] sm:$0xff]   ;;  %v541_v26 = vrot.slane %v1858_v22, 1  ;;  %v1865_v38 = vld [vmem:[#allocation2 + $0x10] sm:$0xff]  }
  0x25   : > { %v543_v27 = vrot.slane %v1859_v23, 1  ;;  %v1860_v28 = vld [vmem:[#allocation2] sm:$0xfe]   ;;  %v468_v44 = vshll.u32 %v1865_v38, 16  ;;  %v1867_v45 = vld [vmem:[#allocation2 + $0x10] sm:$0xff]   ;;  %v1869_v55 = vld [vmem:[#allocation2 + $0x18] sm:$0xff]  }
  0x26   : > { %v1861_v29 = vld [vmem:[#allocation2 + $0x8] sm:$0xff]   ;;  %v538_v32 = vrot.slane %v1860_v28, 1  ;;  %v1862_v33 = vld [vmem:[#allocation2] sm:$0xff]   ;;  %v615_v53 = vshrl.u32 %v1867_v45, 16  ;;  %v618_v59 = vshll.u32 %v1867_v45, 16  ;;  %v1871_v1 = vld [vmem:[#allocation2 + $0x18] sm:$0xff]  }
  0x27   : > { %v544_v31 = vsel %vm537_vm1, %v541_v26, %v543_v27  ;;  %v539_v34 = vrot.slane %v1861_v29, 1  ;;  %v1863_v35 = vld [vmem:[#allocation2 + $0x8] sm:$0xff]   ;;  %v453_v36 = vshrl.u32 %v1862_v33, 16  ;;  %v455_v37 = vshll.u32 %v1862_v33, 16  ;;  %v1868_v54 = vld [vmem:[#allocation2] sm:$0xfe]  }
  0x28   : > { %551 = vrot.lane.b32.xlu0 %v544_v31, %s2003_s26  ;;  %v1866_v39 = vld [vmem:[#allocation2 + $0x8] sm:$0xff]   ;;  %v460_v41 = vshll.u32 %v1863_v35, 16  ;;  %v464_v42 = vshrl.u32 %v1863_v35, 16  ;;  %v470_v51 = vrot.slane %v468_v44, 1  ;;  %v546_v56 = vsel %vm537_vm1, %v543_v27, %v545_v20  ;;  %v1873_v14 = vld [vmem:[#allocation2] sm:$0xff]   ;;  %v1876_v19 = vld [vmem:[#allocation2 + $0x18] sm:$0xff]  }
  0x29   : > { %v540_v40 = vsel %vm537_vm1, %v538_v32, %v539_v34  ;;  %v457_v43 = vrot.slane %v455_v37, 1  ;;  %v606_v46 = vshrl.u32 %v1866_v39, 16  ;;  %v542_v47 = vsel %vm537_vm1, %v539_v34, %v541_v26  ;;  %v1874_v18 = vld [vmem:[#allocation2 + $0x8] sm:$0xff]   ;;  %v1875_v20 = vld [vmem:[%s2551_s1] sm:$0xff]   ;;  %415 = vst.msk [vmem:[#allocation3] sm:$0xff] %vm414_vm4, %v1873_v14  ;;  %v1877_v25 = vld [vmem:[#allocation2 + $0x10] sm:$0xff]  }
  0x2a   : > { %547 = vrot.lane.b32.xlu1 %v540_v40, %s2003_s26  ;;  %v462_v48 = vrot.slane %v460_v41, 1  ;;  %v609_v49 = vshll.u32 %v1866_v39, 16  ;;  %v617_v61 = vrot.slane %v615_v53, 1  ;;  %v598_v62 = vshrl.u32 %v1868_v54, 16  ;;  %416 = vst.msk [vmem:[#allocation3 + $0x8] sm:$0xff] %vm414_vm4, %v1874_v18  ;;  %1775 = vmatprep.subr.bf16.mxu0 %v1875_v20  ;;  %v1878_v28 = vld [vmem:[%s2551_s1 + $0x8] sm:$0xff]  }
  0x2b   : > { %v458_v50 = vor.u32 %v457_v43, %v453_v36  ;;  %v608_v52 = vrot.slane %v606_v46, 1  ;;  %v601_v63 = vshll.u32 %v1868_v54, 16  ;;  %v620_v4 = vrot.slane %v618_v59, 2  ;;  %1776 = vmatpush3.bf16.msra.mxu0 %v1875_v20  ;;  %418 = vst.msk [vmem:[#allocation3 + $0x18] sm:$0xff] %vm414_vm4, %v1876_v19  ;;  %417 = vst.msk [vmem:[#allocation3 + $0x10] sm:$0xff] %vm414_vm4, %v1877_v25 }
  0x2c   : > { %v466_v57 = vor.u32 %v464_v42, %v462_v48  ;;  %v611_v58 = vrot.slane %v609_v49, 2  ;;  %v476_v5 = vshll.u32 %v1869_v55, 16  ;;  %v600_v6 = vrot.slane %v598_v62, 1  ;;  %1777 = vmatprep.subr.bf16.mxu0 %v1878_v28 }
  0x2d   : > { %v463_v60 = vsel %vm451_vm2, %v458_v50, %v462_v48  ;;  %v603_v7 = vrot.slane %v601_v63, 2  ;;  %v480_v8 = vshrl.u32 %v1869_v55, 16  ;;  %v472_v9 = vshrl.u32 %v1865_v38, 16 }
  0x2e   : > { %549 = vrot.lane.b32.xlu1 %v542_v47, %s2003_s26  ;;  %488 = vrot.lane.b32.xlu0 %v463_v60, %s2004_s27  ;;  %v471_v2 = vsel %vm451_vm2, %v466_v57, %v470_v51  ;;  %v612_v3 = vor.u32 %v611_v58, %v608_v52  ;;  %v621_v10 = vor.u32 %v620_v4, %v617_v61  ;;  %v478_v11 = vrot.slane %v476_v5, 1 }
  0x2f   : > { %v624_v12 = vshrl.u32 %v1871_v1, 16  ;;  %v627_v13 = vshll.u32 %v1871_v1, 16  ;;  %v604_v15 = vor.u32 %v603_v7, %v600_v6  ;;  %v474_v24 = vor.u32 %v472_v9, %v470_v51  ;;  %1778 = vmatpush3.bf16.msra.mxu0 %v1878_v28  ;;  %v1687_v51 = vld [vmem:[%s2552_s2] ss:$0 sm:$0xff] }
  0x30   : > { %v622_v21 = vsel %vm596_vm3, %v612_v3, %v621_v10  ;;  %v482_v22 = vor.u32 %v480_v8, %v478_v11  ;;  %v639_v32 = vor.u32 %v638_v17, %v635_v16 }
  0x31   : > { %v626_v23 = vrot.slane %v624_v12, 1  ;;  %v629_v26 = vrot.slane %v627_v13, 2  ;;  %v613_v27 = vsel %vm596_vm3, %v604_v15, %v612_v3  ;;  %v479_v33 = vsel %vm451_vm2, %v474_v24, %v478_v11 }
  0x32   : > { %553 = vrot.lane.b32.xlu1 %v546_v56, %s2003_s26  ;;  %490 = vrot.lane.b32.xlu0 %v471_v2, %s2004_s27  ;;  %v487_v29 = vsel %vm451_vm2, %v482_v22, %v2128_v30  ;;  %s2501_s26 = scalar_lea.hbm %s2559_s9, %s1756_s23 }
  0x33   : > { %v630_v31 = vor.u32 %v629_v26, %v626_v23 }
  0x35   : > { %v640_v34 = vsel %vm596_vm3, %v630_v31, %v639_v32  ;;  %v631_v35 = vsel %vm596_vm3, %v621_v10, %v630_v31 }
  0x36   : > { %643 = vrot.lane.b32.xlu1 %v622_v21, %s2005_s17  ;;  %641 = vrot.lane.b32.xlu0 %v613_v27, %s2005_s17 }
  0x3a   : > { %494 = vrot.lane.b32.xlu1 %v487_v29, %s2004_s27  ;;  %492 = vrot.lane.b32.xlu0 %v479_v33, %s2004_s27 }
  0x3e   : > { %647 = vrot.lane.b32.xlu1 %v640_v34, %s2005_s17  ;;  %645 = vrot.lane.b32.xlu0 %v631_v35, %s2005_s17  ;;  %s1657_s17 = sshll.u32 %s323_s16, 5 }
  0x3f   : > { %s325_s21 = scalar_lea.vmem [#allocation7], %s1657_s17 }
  0x40   : > { %s1591_s24 = sshll.u32 %s325_s21, 4  ;;  %s2503_s24 = int_to_ptr.vmem [resolvable:$true] %s1591_s24 }
  0x9a   : > { %v552_v36 = vpop.permute.xlu0 %551 }
  0x9c   : > { %v548_v30 = vpop.permute.xlu1 %547 }
  0xa0   : > { %v550_v37 = vpop.permute.xlu1 %549  ;;  %v489_v38 = vpop.permute.xlu0 %488 }
  0xa1   : > { %501 = vst.msk [vmem:[#allocation3] sm:$0xff] %vm500_vm5, %v489_v38 }
  0xa2   : > { %560 = vst.msk [vmem:[#allocation3] sm:$0xff] %vm559_vm6, %v548_v30 }
  0xa4   : > { %v554_v39 = vpop.permute.xlu1 %553  ;;  %v491_v40 = vpop.permute.xlu0 %490 }
  0xa5   : > { %502 = vst.msk [vmem:[#allocation3 + $0x8] sm:$0xff] %vm500_vm5, %v491_v40 }
  0xa6   : > { %561 = vst.msk [vmem:[#allocation3 + $0x8] sm:$0xff] %vm559_vm6, %v550_v37 }
  0xa8   : > { %v644_v41 = vpop.permute.xlu1 %643  ;;  %v642_v42 = vpop.permute.xlu0 %641 }
  0xa9   : > { %655 = vst.msk [vmem:[#allocation3 + $0x8] sm:$0xff] %vm653_vm7, %v644_v41  ;;  %654 = vst.msk [vmem:[#allocation3] sm:$0xff] %vm653_vm7, %v642_v42 }
  0xac   : > { %v495_v43 = vpop.permute.xlu1 %494  ;;  %v493_v44 = vpop.permute.xlu0 %492 }
  0xad   : > { %504 = vst.msk [vmem:[#allocation3 + $0x18] sm:$0xff] %vm500_vm5, %v495_v43  ;;  %503 = vst.msk [vmem:[#allocation3 + $0x10] sm:$0xff] %vm500_vm5, %v493_v44  ;;  %vm1138_vm5 = vcmask 785920  }
  0xae   : > { %563 = vst.msk [vmem:[#allocation3 + $0x18] sm:$0xff] %vm559_vm6, %v554_v39  ;;  %562 = vst.msk [vmem:[#allocation3 + $0x10] sm:$0xff] %vm559_vm6, %v552_v36  ;;  %vm1231_vm6 = vcmask 1048320  }
  0xb0   : > { %v648_v45 = vpop.permute.xlu1 %647  ;;  %v659_v46 = vld [vmem:[#allocation3 + $0x8] sm:$0xff]  ;;  %v646_v47 = vpop.permute.xlu0 %645  ;;  %v658_v48 = vld [vmem:[#allocation3] sm:$0xff] }
  0xb1   : > { %657 = vst.msk [vmem:[#allocation3 + $0x18] sm:$0xff] %vm653_vm7, %v648_v45  ;;  %656 = vst.msk [vmem:[#allocation3 + $0x10] sm:$0xff] %vm653_vm7, %v646_v47  ;;  %1779 = vmatprep.mubr.msk.bf16.mxu0 %vm685_vm8, %v658_v48 }
  0xb2   : > { %1780 = vmatmul.mubr.msk.bf16.vlgmr.msra.gmra.mrb[0].mxu0 %vm685_vm8, %v659_v46 }
  0xb8   : > { %v661_v49 = vld [vmem:[#allocation3 + $0x18] sm:$0xff]  ;;  %v660_v50 = vld [vmem:[#allocation3 + $0x10] sm:$0xff] }
  0xb9   : > { %1783 = vmatprep.mubr.msk.bf16.mxu0 %vm685_vm8, %v660_v50 }
  0xba   : > { %1784 = vmatmul.mubr.msk.bf16.gmra.mrb[4].mxu0 %vm685_vm8, %v661_v49 }
 0x185   : > { %v1781_v52 = vpop.f32.mrb[0].mxu0 }
 0x186   : > { %v741_v53 = vadd.f32 %v1781_v52, %v1687_v51  ;;  %v732_v54 = vpop.f32.mrb[1].mxu0  ;;  %v1894_v52 = vld [vmem:[%s2555_s5] sm:$0xff]  }
 0x187   : > { %v1782_v55 = vpop.f32.mrb[2].mxu0  ;;  %v733_v56 = vadd.f32 %v1687_v51, %v732_v54  ;;  %1787 = vmatprep.subr.bf16.mxu1 %v1894_v52 }
 0x188   : > { %v735_v57 = vpop.f32.mrb[3].mxu0  ;;  %v771_v58 = vsel %vm685_vm8, %v741_v53, 0.0  ;;  %v744_v61 = vadd.f32 %v1782_v55, %v1687_v51  ;;  %1788 = vmatpush3.bf16.msra.mxu1 %v1894_v52 }
 0x189   : > { %v736_v59 = vadd.f32 %v1687_v51, %v735_v57  ;;  %772 = vadd.xlane.f32.xlu0 %v771_v58  ;;  %v765_v62 = vsel %vm685_vm8, %v733_v56, 0.0 }
 0x18a   : > { %v774_v6 = vsel %vm685_vm8, %v744_v61, 0.0 }
 0x18b   : > { %v768_v60 = vsel %vm685_vm8, %v736_v59, 0.0 }
 0x18c   : > { %769 = vadd.xlane.f32.xlu1 %v768_v60 }
 0x18d   : > { %v1785_v63 = vpop.f32.mrb[4].mxu0  ;;  %766 = vadd.xlane.f32.xlu0 %v765_v62 }
 0x18e   : > { %v748_v1 = vpop.f32.mrb[5].mxu0  ;;  %v757_v2 = vadd.f32 %v1785_v63, %v1687_v51 }
 0x18f   : > { %v749_v3 = vadd.f32 %v1687_v51, %v748_v1  ;;  %v1786_v4 = vpop.f32.mrb[6].mxu0 }
 0x190   : > { %v751_v5 = vpop.f32.mrb[7].mxu0  ;;  %v783_v10 = vsel %vm685_vm8, %v757_v2, 0.0  ;;  %v760_v11 = vadd.f32 %v1786_v4, %v1687_v51 }
 0x191   : > { %v752_v7 = vadd.f32 %v1687_v51, %v751_v5  ;;  %775 = vadd.xlane.f32.xlu0 %v774_v6  ;;  %v777_v8 = vsel %vm685_vm8, %v749_v3, 0.0 }
 0x192   : > { %778 = vadd.xlane.f32.xlu1 %v777_v8  ;;  %v786_v12 = vsel %vm685_vm8, %v760_v11, 0.0  ;;  %v2243_v8 = vld [vmem:[%s2553_s3] ss:$0 sm:$0xff] }
 0x193   : > { %v780_v9 = vsel %vm685_vm8, %v752_v7, 0.0 }
 0x195   : > { %781 = vadd.xlane.f32.xlu0 %v780_v9 }
 0x196   : > { %784 = vadd.xlane.f32.xlu1 %v783_v10 }
 0x199   : > { %787 = vadd.xlane.f32.xlu0 %v786_v12 }
 0x216   : > { %v773_v13 = vpop.xlane.xlu0 %772 }
 0x217   : > { %v792_v14 = vmul.f32 0.03125, %v773_v13  ;;  %v2249_v13 = vld [vmem:[%s2554_s4] ss:$0 sm:$0xff] }
 0x219   : > { %v2194_v15 = vsub.f32 %v741_v53, %v792_v14  ;;  %v770_v16 = vpop.xlane.xlu1 %769  ;;  %v1895_v53 = vld [vmem:[%s2555_s5 + $0x8] sm:$0xff]  }
 0x21a   : > { %v767_v17 = vpop.xlane.xlu0 %766  ;;  %v791_v21 = vmul.f32 0.03125, %v770_v16  ;;  %1789 = vmatprep.subr.bf16.mxu1 %v1895_v53 }
 0x21b   : > { %v790_v18 = vmul.f32 0.03125, %v767_v17  ;;  %v808_v20 = vmul.f32 %v2194_v15, %v2194_v15  ;;  %1790 = vmatpush3.bf16.msra.mxu1 %v1895_v53 }
 0x21c   : > { %v2203_v25 = vsub.f32 %v736_v59, %v791_v21 }
 0x21d   : > { %v2198_v22 = vsub.f32 %v733_v56, %v790_v18  ;;  %v820_v23 = vsel %vm685_vm8, %v808_v20, 0.0 }
 0x21e   : > { %821 = vadd.xlane.f32.xlu1 %v820_v23  ;;  %v776_v26 = vpop.xlane.xlu0 %775  ;;  %v807_v39 = vmul.f32 %v2203_v25, %v2203_v25 }
 0x21f   : > { %v793_v27 = vmul.f32 0.03125, %v776_v26  ;;  %v779_v24 = vpop.xlane.xlu1 %778  ;;  %v806_v0 = vmul.f32 %v2198_v22, %v2198_v22 }
 0x220   : > { %v794_v19 = vmul.f32 0.03125, %v779_v24  ;;  %v817_v46 = vsel %vm685_vm8, %v807_v39, 0.0 }
 0x221   : > { %v2205_v28 = vsub.f32 %v744_v61, %v793_v27  ;;  %v814_v29 = vsel %vm685_vm8, %v806_v0, 0.0 }
 0x222   : > { %v2208_v31 = vsub.f32 %v749_v3, %v794_v19  ;;  %815 = vadd.xlane.f32.xlu1 %v814_v29  ;;  %v782_v32 = vpop.xlane.xlu0 %781 }
 0x223   : > { %v795_v33 = vmul.f32 0.03125, %v782_v32  ;;  %v785_v34 = vpop.xlane.xlu1 %784  ;;  %v809_v35 = vmul.f32 %v2205_v28, %v2205_v28 }
 0x224   : > { %v796_v36 = vmul.f32 0.03125, %v785_v34  ;;  %v810_v30 = vmul.f32 %v2208_v31, %v2208_v31 }
 0x225   : > { %v2214_v37 = vsub.f32 %v752_v7, %v795_v33  ;;  %v823_v38 = vsel %vm685_vm8, %v809_v35, 0.0 }
 0x226   : > { %v2219_v40 = vsub.f32 %v757_v2, %v796_v36  ;;  %824 = vadd.xlane.f32.xlu0 %v823_v38  ;;  %v788_v41 = vpop.xlane.xlu0 %787  ;;  %v826_v42 = vsel %vm685_vm8, %v810_v30, 0.0 }
 0x227   : > { %v797_v43 = vmul.f32 0.03125, %v788_v41  ;;  %827 = vadd.xlane.f32.xlu1 %v826_v42  ;;  %v811_v47 = vmul.f32 %v2214_v37, %v2214_v37 }
 0x228   : > { %v812_v44 = vmul.f32 %v2219_v40, %v2219_v40 }
 0x229   : > { %v2224_v45 = vsub.f32 %v760_v11, %v797_v43  ;;  %v829_v49 = vsel %vm685_vm8, %v811_v47, 0.0 }
 0x22a   : > { %818 = vadd.xlane.f32.xlu0 %v817_v46  ;;  %v832_v48 = vsel %vm685_vm8, %v812_v44, 0.0 }
 0x22b   : > { %833 = vadd.xlane.f32.xlu1 %v832_v48  ;;  %v813_v50 = vmul.f32 %v2224_v45, %v2224_v45 }
 0x22d   : > { %v835_v51 = vsel %vm685_vm8, %v813_v50, 0.0 }
 0x22e   : > { %830 = vadd.xlane.f32.xlu0 %v829_v49 }
 0x232   : > { %836 = vadd.xlane.f32.xlu0 %v835_v51 }
 0x2ab   : > { %v822_v54 = vpop.xlane.xlu1 %821 }
 0x2ac   : > { %v840_v55 = vmul.f32 0.03125, %v822_v54 }
 0x2ae   : > { %v848_v56 = vadd.f32 1e-05, %v840_v55 }
 0x2af   : > { %v816_v57 = vpop.xlane.xlu1 %815 }
 0x2b0   : > { %1906 = vrsqrt.f32 %v848_v56  ;;  %v838_v58 = vmul.f32 0.03125, %v816_v57 }
 0x2b2   : > { %v846_v59 = vadd.f32 1e-05, %v838_v58 }
 0x2b3   : > { %v825_v60 = vpop.xlane.xlu0 %824 }
 0x2b4   : > { %1908 = vrsqrt.f32 %v846_v59  ;;  %v841_v61 = vmul.f32 0.03125, %v825_v60  ;;  %v828_v62 = vpop.xlane.xlu1 %827 }
 0x2b5   : > { %v842_v63 = vmul.f32 0.03125, %v828_v62 }
 0x2b6   : > { %v849_v1 = vadd.f32 1e-05, %v841_v61 }
 0x2b7   : > { %v850_v2 = vadd.f32 1e-05, %v842_v63  ;;  %v819_v3 = vpop.xlane.xlu0 %818 }
 0x2b8   : > { %1910 = vrsqrt.f32 %v849_v1  ;;  %v839_v4 = vmul.f32 0.03125, %v819_v3  ;;  %v834_v5 = vpop.xlane.xlu1 %833  ;;  %v1896_v1 = vld [vmem:[%s2555_s5 + $0x10] sm:$0xff]  }
 0x2b9   : > { %1912 = vrsqrt.f32 %v850_v2  ;;  %v844_v6 = vmul.f32 0.03125, %v834_v5  ;;  %1791 = vmatprep.subr.bf16.mxu1 %v1896_v1 }
 0x2ba   : > { %v1907_v7 = vpop.eup %1906  ;;  %v847_v9 = vadd.f32 1e-05, %v839_v4  ;;  %1792 = vmatpush3.bf16.msra.mxu1 %v1896_v1 }
 0x2bb   : > { %v864_v10 = vmul.f32 %v1907_v7, %v2194_v15  ;;  %v852_v11 = vadd.f32 1e-05, %v844_v6  ;;  %v831_v12 = vpop.xlane.xlu0 %830 }
 0x2bc   : > { %1914 = vrsqrt.f32 %v847_v9  ;;  %v843_v14 = vmul.f32 0.03125, %v831_v12 }
 0x2bd   : > { %v878_v16 = vmul.f32 %v2243_v8, %v864_v10  ;;  %1916 = vrsqrt.f32 %v852_v11 }
 0x2be   : > { %v1909_v17 = vpop.eup %1908  ;;  %v851_v18 = vadd.f32 1e-05, %v843_v14 }
 0x2bf   : > { %v892_v20 = vadd.f32 %v2249_v13, %v878_v16  ;;  %v862_v21 = vmul.f32 %v1909_v17, %v2198_v22  ;;  %v837_v23 = vpop.xlane.xlu0 %836 }
 0x2c0   : > { %1918 = vrsqrt.f32 %v851_v18  ;;  %v845_v15 = vmul.f32 0.03125, %v837_v23  ;;  %v1889_v23 = vld [vmem:[#allocation4 + $0x20] ss:$0 sps:$4 sm:$0x11]  }
 0x2c1   : > { %vm900_vm10 = vcmp.ge.f32.partialorder %v892_v20, 0.0  ;;  %v908_v26 = vmul.f32 0.1, %v892_v20  ;;  %v876_v27 = vmul.f32 %v2243_v8, %v862_v21 }
 0x2c2   : > { %v1911_v24 = vpop.eup %1910  ;;  %v853_v0 = vadd.f32 1e-05, %v845_v15 }
 0x2c3   : > { %v1913_v19 = vpop.eup %1912  ;;  %v2255_v29 = vsel %vm900_vm10, %v892_v20, %v908_v26  ;;  %v890_v32 = vadd.f32 %v2249_v13, %v876_v27  ;;  %v865_v33 = vmul.f32 %v1911_v24, %v2205_v28 }
 0x2c4   : > { %v1750_v34 = vpack.c.bf16 %v2255_v29, %v2255_v29  ;;  %v866_v22 = vmul.f32 %v1913_v19, %v2208_v31  ;;  %1920 = vrsqrt.f32 %v853_v0 }
 0x2c5   : > { %vm898_vm11 = vcmp.ge.f32.partialorder %v890_v32, 0.0  ;;  %v906_v35 = vmul.f32 0.1, %v890_v32  ;;  %v879_v36 = vmul.f32 %v2243_v8, %v865_v33 }
 0x2c6   : > { %v1915_v30 = vpop.eup %1914  ;;  %957 = vst.msk [vmem:[#allocation4 + $0x8] sm:$0xf] %vm954_vm9, %v1750_v34  ;;  %v880_v38 = vmul.f32 %v2243_v8, %v866_v22 }
 0x2c7   : > { %v1917_v39 = vpop.eup %1916  ;;  %v2265_v41 = vsel %vm898_vm11, %v890_v32, %v906_v35  ;;  %v893_v28 = vadd.f32 %v2249_v13, %v879_v36  ;;  %v863_v42 = vmul.f32 %v1915_v30, %v2203_v25 }
 0x2c8   : > { %v1748_v31 = vpack.c.bf16 %v2265_v41, %v2265_v41  ;;  %v894_v43 = vadd.f32 %v2249_v13, %v880_v38  ;;  %v868_v44 = vmul.f32 %v1917_v39, %v2219_v40 }
 0x2c9   : > { %vm901_vm12 = vcmp.ge.f32.partialorder %v893_v28, 0.0  ;;  %v909_v46 = vmul.f32 0.1, %v893_v28  ;;  %v877_v47 = vmul.f32 %v2243_v8, %v863_v42 }
 0x2ca   : > { %v1919_v48 = vpop.eup %1918  ;;  %955 = vst.msk [vmem:[#allocation4] sm:$0xf] %vm954_vm9, %v1748_v31  ;;  %vm902_vm13 = vcmp.ge.f32.partialorder %v894_v43, 0.0  ;;  %v910_v49 = vmul.f32 0.1, %v894_v43  ;;  %v882_v50 = vmul.f32 %v2243_v8, %v868_v44  ;;  %v1064_v44 = vshll.u32 %v1889_v23, 16 }
 0x2cb   : > { %v2276_v51 = vsel %vm901_vm12, %v893_v28, %v909_v46  ;;  %v891_v25 = vadd.f32 %v2249_v13, %v877_v47  ;;  %v867_v52 = vmul.f32 %v1919_v48, %v2214_v37  ;;  %v1898_v47 = vld [vmem:[%s2555_s5 + $0x18] sm:$0xff]   ;;  %v1900_v48 = vld [vmem:[%s2555_s5 + $0x20] sm:$0xff]  }
 0x2cc   : > { %v1751_v40 = vpack.c.bf16 %v2276_v51, %v2276_v51  ;;  %v2282_v53 = vsel %vm902_vm13, %v894_v43, %v910_v49  ;;  %v896_v54 = vadd.f32 %v2249_v13, %v882_v50  ;;  %1793 = vmatprep.subr.bf16.mxu1 %v1898_v47  ;;  %v1066_v1 = vrot.slane %v1064_v44, 1 }
 0x2cd   : > { %v1752_v55 = vpack.c.bf16 %v2282_v53, %v2282_v53  ;;  %vm899_vm14 = vcmp.ge.f32.partialorder %v891_v25, 0.0  ;;  %v907_v56 = vmul.f32 0.1, %v891_v25  ;;  %v881_v57 = vmul.f32 %v2243_v8, %v867_v52  ;;  %1794 = vmatpush3.bf16.msra.mxu1 %v1898_v47 }
 0x2ce   : > { %v1921_v58 = vpop.eup %1920  ;;  %958 = vst.msk [vmem:[#allocation4 + $0xc] sm:$0xf] %vm954_vm9, %v1751_v40  ;;  %vm904_vm15 = vcmp.ge.f32.partialorder %v896_v54, 0.0  ;;  %v912_v59 = vmul.f32 0.1, %v896_v54  ;;  %1795 = vmatprep.subr.bf16.mxu1 %v1900_v48 }
 0x2cf   : > { %959 = vst.msk [vmem:[#allocation4 + $0x10] sm:$0xf] %vm954_vm9, %v1752_v55  ;;  %v2290_v37 = vsel %vm899_vm14, %v891_v25, %v907_v56  ;;  %v895_v60 = vadd.f32 %v2249_v13, %v881_v57  ;;  %v869_v61 = vmul.f32 %v1921_v58, %v2224_v45 }
 0x2d0   : > { %v1749_v62 = vpack.c.bf16 %v2290_v37, %v2290_v37  ;;  %v2296_v63 = vsel %vm904_vm15, %v896_v54, %v912_v59 }
 0x2d1   : > { %v1754_v2 = vpack.c.bf16 %v2296_v63, %v2296_v63  ;;  %vm903_vm0 = vcmp.ge.f32.partialorder %v895_v60, 0.0  ;;  %v911_v3 = vmul.f32 0.1, %v895_v60  ;;  %v883_v4 = vmul.f32 %v2243_v8, %v869_v61  ;;  %1796 = vmatpush3.bf16.msra.mxu1 %v1900_v48 }
 0x2d2   : > { %956 = vst.msk [vmem:[#allocation4 + $0x4] sm:$0xf] %vm954_vm9, %v1749_v62 }
 0x2d3   : > { %961 = vst.msk [vmem:[#allocation4 + $0x18] sm:$0xf] %vm954_vm9, %v1754_v2  ;;  %v2306_v45 = vsel %vm903_vm0, %v895_v60, %v911_v3  ;;  %v897_v5 = vadd.f32 %v2249_v13, %v883_v4  ;;  %v1902_v4 = vld [vmem:[%s2555_s5 + $0x28] sm:$0xff]  }
 0x2d4   : > { %v1753_v6 = vpack.c.bf16 %v2306_v45, %v2306_v45  ;;  %1797 = vmatprep.subr.bf16.mxu1 %v1902_v4 }
 0x2d5   : > { %vm905_vm4 = vcmp.ge.f32.partialorder %v897_v5, 0.0  ;;  %v913_v7 = vmul.f32 0.1, %v897_v5  ;;  %v2311_v9 = vld [vmem:[#allocation4 + $0x8] sm:$0xff]   ;;  %1798 = vmatpush3.bf16.msra.mxu1 %v1902_v4 }
 0x2d6   : > { %960 = vst.msk [vmem:[#allocation4 + $0x14] sm:$0xf] %vm954_vm9, %v1753_v6  ;;  %v1882_v8 = vld [vmem:[#allocation4 + $0x8] sm:$0xff]   ;;  %v1118_v18 = vrot.slane %v2311_v9, 1 }
 0x2d7   : > { %v2314_v10 = vsel %vm905_vm4, %v897_v5, %v913_v7  ;;  %v1884_v11 = vld [vmem:[#allocation4 + $0x8] sm:$0xff]   ;;  %v1184_v14 = vshrl.u32 %v1882_v8, 16  ;;  %v1187_v16 = vshll.u32 %v1882_v8, 16 }
 0x2d8   : > { %v1755_v12 = vpack.c.bf16 %v2314_v10, %v2314_v10  ;;  %v1899_v13 = vld [vmem:[#allocation4 + $0x8] sm:$0xff]   ;;  %v1040_v24 = vshll.u32 %v1884_v11, 16  ;;  %v1044_v50 = vshrl.u32 %v1884_v11, 16 }
 0x2d9   : > { %v1879_v17 = vld [vmem:[#allocation4] sm:$0xfe]   ;;  %v1186_v21 = vrot.slane %v1184_v14, 1  ;;  %997 = vst.msk [vmem:[#allocation5 + $0x8] sm:$0xff] %vm685_vm8, %v1899_v13  ;;  %v1189_v26 = vrot.slane %v1187_v16, 2 }
 0x2da   : > { %962 = vst.msk [vmem:[#allocation4 + $0x1c] sm:$0xf] %vm954_vm9, %v1755_v12  ;;  %v1881_v20 = vld [vmem:[#allocation4] sm:$0xfe]   ;;  %v1117_v15 = vrot.slane %v1879_v17, 1  ;;  %v1042_v22 = vrot.slane %v1040_v24, 1 }
 0x2db   : > { %v1883_v27 = vld [vmem:[#allocation4] sm:$0xff]   ;;  %v1176_v0 = vshrl.u32 %v1881_v20, 16  ;;  %v1179_v19 = vshll.u32 %v1881_v20, 16  ;;  %v2327_v31 = vor.u32 %v1189_v26, %v1186_v21  ;;  %v1904_v20 = vld [vmem:[%s2555_s5 + $0x30] sm:$0xff]  }
 0x2dc   : > { %v1119_v32 = vsel %vm537_vm1, %v1117_v15, %v1118_v18  ;;  %v1033_v33 = vshrl.u32 %v1883_v27, 16  ;;  %v1035_v34 = vshll.u32 %v1883_v27, 16  ;;  %v1897_v46 = vld [vmem:[#allocation4] sm:$0xff]   ;;  %v1046_v57 = vor.u32 %v1044_v50, %v1042_v22  ;;  %1799 = vmatprep.subr.bf16.mxu1 %v1904_v20 }
 0x2dd   : > { %1126 = vrot.lane.b32.xlu1 %v1119_v32, %s2006_s22  ;;  %v1178_v35 = vrot.slane %v1176_v0, 1  ;;  %v1181_v36 = vrot.slane %v1179_v19, 2  ;;  %v1885_v30 = vld [vmem:[#allocation4 + $0x10] sm:$0xff]   ;;  %996 = vst.msk [vmem:[#allocation5] sm:$0xff] %vm685_vm8, %v1897_v46  ;;  %1800 = vmatpush3.bf16.msra.mxu1 %v1904_v20 }
 0x2de   : > { %v2325_v38 = vld [vmem:[#allocation4 + $0x10] sm:$0xff]   ;;  %v1037_v39 = vrot.slane %v1035_v34, 1  ;;  %v1120_v40 = vrot.slane %v1885_v30, 1  ;;  %v1893_v13 = vld [vmem:[#allocation4 + $0x20] ss:$0 sps:$4 sm:$0x33]  }
 0x2df   : > { %v1890_v28 = vld [vmem:[#allocation4 + $0x10] sm:$0xff]   ;;  %v1182_v42 = vor.u32 %v1181_v36, %v1178_v35  ;;  %v1048_v43 = vshll.u32 %v2325_v38, 16  ;;  %v1052_v9 = vshrl.u32 %v2325_v38, 16  ;;  %v1891_v27 = vld [vmem:[#allocation4 + $0x20] ss:$0 sps:$4 sm:$0x11]  }
 0x2e0   : > { %v1038_v49 = vor.u32 %v1037_v39, %v1033_v33  ;;  %v1193_v58 = vshrl.u32 %v1890_v28, 16  ;;  %v1196_v59 = vshll.u32 %v1890_v28, 16  ;;  %v1903_v11 = vld [vmem:[#allocation4 + $0x10] sm:$0xff]   ;;  %v1121_v12 = vsel %vm537_vm1, %v1118_v18, %v1120_v40 }
 0x2e1   : > { %v2336_v25 = vld [vmem:[#allocation4 + $0x18] sm:$0xff]   ;;  %v1191_v52 = vsel %vm596_vm3, %v1182_v42, %v2327_v31  ;;  %v1050_v54 = vrot.slane %v1048_v43, 1  ;;  %998 = vst.msk [vmem:[#allocation5 + $0x10] sm:$0xff] %vm685_vm8, %v1903_v11  ;;  %v1211_v24 = vshrl.u32 %v1893_v13, 16  ;;  %v1214_v0 = vshll.u32 %v1893_v13, 16 }
 0x2e2   : > { %v1888_v55 = vld [vmem:[#allocation4 + $0x18] sm:$0xff]   ;;  %1219 = vrot.lane.b32.xlu0 %v1191_v52, %s2007_s28  ;;  %v1043_v56 = vsel %vm451_vm2, %v1038_v49, %v1042_v22  ;;  %v1122_v3 = vrot.slane %v2336_v25, 1  ;;  %v1195_v14 = vrot.slane %v1193_v58, 1  ;;  %v1198_v16 = vrot.slane %v1196_v59, 2 }
 0x2e3   : > { %v1892_v60 = vld [vmem:[#allocation4 + $0x18] sm:$0xff]   ;;  %1068 = vrot.lane.b32.xlu1 %v1043_v56, %s2008_s29  ;;  %v1056_v62 = vshll.u32 %v1888_v55, 16  ;;  %v1051_v2 = vsel %vm451_vm2, %v1046_v57, %v1050_v54  ;;  %v1060_v6 = vshrl.u32 %v1888_v55, 16  ;;  %v1054_v19 = vor.u32 %v1052_v9, %v1050_v54 }
 0x2e4   : > { %v1901_v61 = vld [vmem:[#allocation4 + $0x18] sm:$0xff]   ;;  %v1202_v7 = vshrl.u32 %v1892_v60, 16  ;;  %v1205_v8 = vshll.u32 %v1892_v60, 16  ;;  %v1123_v18 = vsel %vm537_vm1, %v1120_v40, %v1122_v3  ;;  %v1199_v26 = vor.u32 %v1198_v16, %v1195_v14 }
 0x2e5   : > { %999 = vst.msk [vmem:[#allocation5 + $0x18] sm:$0xff] %vm685_vm8, %v1901_v61  ;;  %v1058_v5 = vrot.slane %v1056_v62, 1  ;;  %v1905_v32 = vld [vmem:[%s2555_s5 + $0x38] sm:$0xff]   ;;  %v1124_v35 = vrot.slane %v1891_v27, 1  ;;  %v1213_v36 = vrot.slane %v1211_v24, 1  ;;  %v1216_v30 = vrot.slane %v1214_v0, 2 }
 0x2e6   : > { %1070 = vrot.lane.b32.xlu0 %v1051_v2, %s2008_s29  ;;  %v1204_v23 = vrot.slane %v1202_v7, 1  ;;  %v1207_v15 = vrot.slane %v1205_v8, 2  ;;  %v1200_v22 = vsel %vm596_vm3, %v2327_v31, %v1199_v26  ;;  %1801 = vmatprep.subr.bf16.mxu1 %v1905_v32  ;;  %v1723_v59 = vld [vmem:[%s2556_s6] ss:$0 sm:$0xff] }
 0x2e7   : > { %1128 = vrot.lane.b32.xlu1 %v1121_v12, %s2006_s22  ;;  %v1062_v17 = vor.u32 %v1060_v6, %v1058_v5  ;;  %v1059_v33 = vsel %vm451_vm2, %v1054_v19, %v1058_v5  ;;  %v1125_v39 = vsel %vm537_vm1, %v1122_v3, %v1124_v35  ;;  %v1217_v28 = vor.u32 %v1216_v30, %v1213_v36 }
 0x2e8   : > { %v1208_v34 = vor.u32 %v1207_v15, %v1204_v23  ;;  %1802 = vmatpush3.bf16.msra.mxu1 %v1905_v32 }
 0x2e9   : > { %v1067_v21 = vsel %vm451_vm2, %v1062_v17, %v1066_v1  ;;  %vm1080_vm2 = vcmask 523520  }
 0x2ea   : > { %1130 = vrot.lane.b32.xlu0 %v1123_v18, %s2006_s22  ;;  %v1209_v38 = vsel %vm596_vm3, %v1199_v26, %v1208_v34  ;;  %v1218_v42 = vsel %vm596_vm3, %v1208_v34, %v1217_v28 }
 0x2eb   : > { %1074 = vrot.lane.b32.xlu1 %v1067_v21, %s2008_s29 }
 0x2ee   : > { %1072 = vrot.lane.b32.xlu0 %v1059_v33, %s2008_s29  ;;  %s2009_s29 = smov [#allocation7]  }
 0x2ef   : > { %1221 = vrot.lane.b32.xlu1 %v1200_v22, %s2007_s28  ;;  %s1942_s14 = sshll.u32 %s2009_s29, 4  ;;  %s1943_s14 = int_to_ptr.vmem [resolvable:$false] %s1942_s14 }
 0x2f0   : > { %s1944_s17 = scalar_lea.vmem %s1943_s14, 1024  ;;  %p1945_p0 = scmp.lt.s32.totalorder %s2503_s24, %s1943_s14 }
 0x2f2   : > { %1223 = vrot.lane.b32.xlu0 %v1209_v38, %s2007_s28 }
 0x2f3   : > { %1132 = vrot.lane.b32.xlu1 %v1125_v39, %s2006_s22 }
 0x2f7   : > { %1225 = vrot.lane.b32.xlu1 %v1218_v42, %s2007_s28  ;;  %s1938_s28 = scalar_lea.vmem %s2503_s24, 512 }
 0x2f8   : > { %p1939_p11 = scmp.ne.s32.totalorder %s2503_s24, %s1938_s28  ;;  %p1946_p1 = scmp.lt.s32.totalorder %s1944_s17, %s1938_s28 }
 0x2fa   : > { %p1940_p12 = pnand %p1939_p11, %p2099_p5  ;;  %p1947_p2 = por %p1946_p1, %p1945_p0 }
 0x2fc   : > { %p1941_p13 = pneg %p1940_p12 }
 0x2fe   : > { %p1948_p3 = pnand %p1947_p2, %p1941_p13 }
 0x34f   : > { %v1127_v31 = vpop.permute.xlu1 %1126 }
 0x354   : > { %v1220_v43 = vpop.permute.xlu0 %1219 }
 0x355   : > { %v1069_v44 = vpop.permute.xlu1 %1068 }
 0x356   : > { %1081 = vst.msk [vmem:[#allocation5] sm:$0xff] %vm1080_vm2, %v1069_v44 }
 0x357   : > { %1139 = vst.msk [vmem:[#allocation5] sm:$0xff] %vm1138_vm5, %v1127_v31 }
 0x358   : > { %1232 = vst.msk [vmem:[#allocation5] sm:$0xff] %vm1231_vm6, %v1220_v43  ;;  %v1071_v46 = vpop.permute.xlu0 %1070 }
 0x359   : > { %v1129_v47 = vpop.permute.xlu1 %1128  ;;  %1082 = vst.msk [vmem:[#allocation5 + $0x8] sm:$0xff] %vm1080_vm2, %v1071_v46 }
 0x35a   : > { %1140 = vst.msk [vmem:[#allocation5 + $0x8] sm:$0xff] %vm1138_vm5, %v1129_v47 }
 0x35c   : > { %v1131_v48 = vpop.permute.xlu0 %1130 }
 0x35d   : > { %v1075_v49 = vpop.permute.xlu1 %1074 }
 0x35e   : > { %1084 = vst.msk [vmem:[#allocation5 + $0x18] sm:$0xff] %vm1080_vm2, %v1075_v49 }
 0x35f   : > { %v1236_v50 = vld [vmem:[#allocation5] sm:$0xff] }
 0x360   : > { %1803 = vmatprep.mubr.bf16.mxu1 %v1236_v50  ;;  %v1073_v25 = vpop.permute.xlu0 %1072 }
 0x361   : > { %v1222_v52 = vpop.permute.xlu1 %1221  ;;  %1083 = vst.msk [vmem:[#allocation5 + $0x10] sm:$0xff] %vm1080_vm2, %v1073_v25 }
 0x362   : > { %1233 = vst.msk [vmem:[#allocation5 + $0x8] sm:$0xff] %vm1231_vm6, %v1222_v52 }
 0x363   : > { %1141 = vst.msk [vmem:[#allocation5 + $0x10] sm:$0xff] %vm1138_vm5, %v1131_v48 }
 0x364   : > { %v1224_v40 = vpop.permute.xlu0 %1223 }
 0x365   : > { %v1133_v54 = vpop.permute.xlu1 %1132  ;;  %1234 = vst.msk [vmem:[#allocation5 + $0x10] sm:$0xff] %vm1231_vm6, %v1224_v40 }
 0x366   : > { %1142 = vst.msk [vmem:[#allocation5 + $0x18] sm:$0xff] %vm1138_vm5, %v1133_v54 }
 0x369   : > { %v1226_v55 = vpop.permute.xlu1 %1225  ;;  %v1237_v56 = vld [vmem:[#allocation5 + $0x8] sm:$0xff] }
 0x36a   : > { %1235 = vst.msk [vmem:[#allocation5 + $0x18] sm:$0xff] %vm1231_vm6, %v1226_v55  ;;  %1804 = vmatmul.mubr.bf16.vlgmr.msra.gmra.mrb[0].mxu1 %v1237_v56 }
 0x36c   : > { %v1238_v57 = vld [vmem:[#allocation5 + $0x10] sm:$0xff] }
 0x36d   : > { %1807 = vmatprep.mubr.bf16.mxu1 %v1238_v57 }
 0x371   : > { %v1239_v58 = vld [vmem:[#allocation5 + $0x18] sm:$0xff] }
 0x372   : > { %1808 = vmatmul.mubr.bf16.gmra.mrb[4].mxu1 %v1239_v58 }
 0x43d   : > { %v1805_v60 = vpop.f32.mrb[0].mxu1 }
 0x43e   : > { %v1354_v61 = vadd.f32 %v1805_v60, %v1723_v59  ;;  %v1345_v62 = vpop.f32.mrb[1].mxu1 }
 0x43f   : > { %v1806_v1 = vpop.f32.mrb[2].mxu1  ;;  %v1346_v2 = vadd.f32 %v1723_v59, %v1345_v62 }
 0x440   : > { %v1348_v3 = vpop.f32.mrb[3].mxu1  ;;  %v1384_v4 = vsel %vm685_vm8, %v1354_v61, 0.0  ;;  %v1357_v7 = vadd.f32 %v1806_v1, %v1723_v59 }
 0x441   : > { %v1349_v5 = vadd.f32 %v1723_v59, %v1348_v3  ;;  %1385 = vadd.xlane.f32.xlu0 %v1384_v4  ;;  %v1378_v8 = vsel %vm685_vm8, %v1346_v2, 0.0 }
 0x442   : > { %v1387_v17 = vsel %vm685_vm8, %v1357_v7, 0.0 }
 0x443   : > { %v1381_v6 = vsel %vm685_vm8, %v1349_v5, 0.0 }
 0x444   : > { %1382 = vadd.xlane.f32.xlu1 %v1381_v6 }
 0x445   : > { %1379 = vadd.xlane.f32.xlu0 %v1378_v8  ;;  %v1809_v11 = vpop.f32.mrb[4].mxu1 }
 0x446   : > { %v1361_v12 = vpop.f32.mrb[5].mxu1  ;;  %v1370_v20 = vadd.f32 %v1809_v11, %v1723_v59 }
 0x447   : > { %v1362_v14 = vadd.f32 %v1723_v59, %v1361_v12  ;;  %v1810_v16 = vpop.f32.mrb[6].mxu1 }
 0x448   : > { %v1364_v13 = vpop.f32.mrb[7].mxu1  ;;  %v1373_v23 = vadd.f32 %v1810_v16, %v1723_v59  ;;  %v1396_v15 = vsel %vm685_vm8, %v1370_v20, 0.0 }
 0x449   : > { %v1365_v9 = vadd.f32 %v1723_v59, %v1364_v13  ;;  %1388 = vadd.xlane.f32.xlu0 %v1387_v17  ;;  %v1390_v18 = vsel %vm685_vm8, %v1362_v14, 0.0 }
 0x44a   : > { %1391 = vadd.xlane.f32.xlu1 %v1390_v18  ;;  %v1399_v26 = vsel %vm685_vm8, %v1373_v23, 0.0 }
 0x44b   : > { %v1393_v21 = vsel %vm685_vm8, %v1365_v9, 0.0 }
 0x44d   : > { %1394 = vadd.xlane.f32.xlu0 %v1393_v21 }
 0x44e   : > { %1397 = vadd.xlane.f32.xlu1 %v1396_v15 }
 0x451   : > { %1400 = vadd.xlane.f32.xlu0 %v1399_v26 }
 0x4ce   : > { %v1386_v27 = vpop.xlane.xlu0 %1385 }
 0x4cf   : > { %v1404_v24 = vmul.f32 0.03125, %v1386_v27 }
 0x4d1   : > { %v2401_v0 = vsub.f32 %v1354_v61, %v1404_v24  ;;  %v1383_v19 = vpop.xlane.xlu1 %1382  ;;  %v2444_v24 = vld [vmem:[%s2557_s7] ss:$0 sm:$0xff] }
 0x4d2   : > { %v1380_v32 = vpop.xlane.xlu0 %1379  ;;  %v1403_v22 = vmul.f32 0.03125, %v1383_v19 }
 0x4d3   : > { %v1402_v33 = vmul.f32 0.03125, %v1380_v32  ;;  %v1420_v34 = vmul.f32 %v2401_v0, %v2401_v0 }
 0x4d4   : > { %v2410_v31 = vsub.f32 %v1349_v5, %v1403_v22  ;;  %v2450_v22 = vld [vmem:[%s2558_s8] ss:$0 sm:$0xff] }
 0x4d5   : > { %v2405_v35 = vsub.f32 %v1346_v2, %v1402_v33  ;;  %v1432_v36 = vsel %vm685_vm8, %v1420_v34, 0.0 }
 0x4d6   : > { %1433 = vadd.xlane.f32.xlu1 %v1432_v36  ;;  %v1389_v30 = vpop.xlane.xlu0 %1388  ;;  %v1419_v55 = vmul.f32 %v2410_v31, %v2410_v31 }
 0x4d7   : > { %v1405_v38 = vmul.f32 0.03125, %v1389_v30  ;;  %v1392_v39 = vpop.xlane.xlu1 %1391  ;;  %v1418_v28 = vmul.f32 %v2405_v35, %v2405_v35 }
 0x4d8   : > { %v1406_v42 = vmul.f32 0.03125, %v1392_v39  ;;  %v1429_v62 = vsel %vm685_vm8, %v1419_v55, 0.0 }
 0x4d9   : > { %v2412_v43 = vsub.f32 %v1357_v7, %v1405_v38  ;;  %v1426_v44 = vsel %vm685_vm8, %v1418_v28, 0.0 }
 0x4da   : > { %v2415_v46 = vsub.f32 %v1362_v14, %v1406_v42  ;;  %1427 = vadd.xlane.f32.xlu1 %v1426_v44  ;;  %v1395_v47 = vpop.xlane.xlu0 %1394 }
 0x4db   : > { %v1407_v48 = vmul.f32 0.03125, %v1395_v47  ;;  %v1398_v49 = vpop.xlane.xlu1 %1397  ;;  %v1421_v50 = vmul.f32 %v2412_v43, %v2412_v43 }
 0x4dc   : > { %v1408_v25 = vmul.f32 0.03125, %v1398_v49  ;;  %v1422_v52 = vmul.f32 %v2415_v46, %v2415_v46 }
 0x4dd   : > { %v2421_v40 = vsub.f32 %v1365_v9, %v1407_v48  ;;  %v1435_v54 = vsel %vm685_vm8, %v1421_v50, 0.0 }
 0x4de   : > { %v2426_v56 = vsub.f32 %v1370_v20, %v1408_v25  ;;  %1436 = vadd.xlane.f32.xlu0 %v1435_v54  ;;  %v1401_v57 = vpop.xlane.xlu0 %1400  ;;  %v1438_v58 = vsel %vm685_vm8, %v1422_v52, 0.0 }
 0x4df   : > { %v1409_v59 = vmul.f32 0.03125, %v1401_v57  ;;  %1439 = vadd.xlane.f32.xlu1 %v1438_v58  ;;  %v1423_v1 = vmul.f32 %v2421_v40, %v2421_v40 }
 0x4e0   : > { %v1424_v60 = vmul.f32 %v2426_v56, %v2426_v56 }
 0x4e1   : > { %v2431_v61 = vsub.f32 %v1373_v23, %v1409_v59  ;;  %v1441_v3 = vsel %vm685_vm8, %v1423_v1, 0.0 }
 0x4e2   : > { %1430 = vadd.xlane.f32.xlu0 %v1429_v62  ;;  %v1444_v2 = vsel %vm685_vm8, %v1424_v60, 0.0 }
 0x4e3   : > { %1445 = vadd.xlane.f32.xlu1 %v1444_v2  ;;  %v1425_v4 = vmul.f32 %v2431_v61, %v2431_v61 }
 0x4e5   : > { %v1447_v5 = vsel %vm685_vm8, %v1425_v4, 0.0 }
 0x4e6   : > { %1442 = vadd.xlane.f32.xlu0 %v1441_v3 }
 0x4ea   : > { %1448 = vadd.xlane.f32.xlu0 %v1447_v5 }
 0x563   : > { %v1434_v6 = vpop.xlane.xlu1 %1433 }
 0x564   : > { %v1452_v7 = vmul.f32 0.03125, %v1434_v6 }
 0x566   : > { %v1460_v8 = vadd.f32 1e-05, %v1452_v7 }
 0x567   : > { %v1428_v11 = vpop.xlane.xlu1 %1427 }
 0x568   : > { %1922 = vrsqrt.f32 %v1460_v8  ;;  %v1450_v12 = vmul.f32 0.03125, %v1428_v11 }
 0x56a   : > { %v1458_v14 = vadd.f32 1e-05, %v1450_v12 }
 0x56b   : > { %v1437_v16 = vpop.xlane.xlu0 %1436 }
 0x56c   : > { %1924 = vrsqrt.f32 %v1458_v14  ;;  %v1453_v13 = vmul.f32 0.03125, %v1437_v16  ;;  %v1440_v17 = vpop.xlane.xlu1 %1439 }
 0x56d   : > { %v1454_v20 = vmul.f32 0.03125, %v1440_v17 }
 0x56e   : > { %v1461_v9 = vadd.f32 1e-05, %v1453_v13 }
 0x56f   : > { %v1462_v18 = vadd.f32 1e-05, %v1454_v20  ;;  %v1431_v21 = vpop.xlane.xlu0 %1430 }
 0x570   : > { %1926 = vrsqrt.f32 %v1461_v9  ;;  %v1451_v23 = vmul.f32 0.03125, %v1431_v21  ;;  %v1446_v15 = vpop.xlane.xlu1 %1445 }
 0x571   : > { %1928 = vrsqrt.f32 %v1462_v18  ;;  %v1456_v26 = vmul.f32 0.03125, %v1446_v15 }
 0x572   : > { %v1923_v27 = vpop.eup %1922  ;;  %v1459_v19 = vadd.f32 1e-05, %v1451_v23 }
 0x573   : > { %v1476_v32 = vmul.f32 %v1923_v27, %v2401_v0  ;;  %v1464_v33 = vadd.f32 1e-05, %v1456_v26  ;;  %v1443_v34 = vpop.xlane.xlu0 %1442 }
 0x574   : > { %1930 = vrsqrt.f32 %v1459_v19  ;;  %v1455_v36 = vmul.f32 0.03125, %v1443_v34 }
 0x575   : > { %v1490_v30 = vmul.f32 %v2444_v24, %v1476_v32  ;;  %1932 = vrsqrt.f32 %v1464_v33 }
 0x576   : > { %v1925_v38 = vpop.eup %1924  ;;  %v1463_v39 = vadd.f32 1e-05, %v1455_v36 }
 0x577   : > { %v1504_v28 = vadd.f32 %v2450_v22, %v1490_v30  ;;  %v1474_v42 = vmul.f32 %v1925_v38, %v2405_v35  ;;  %v1449_v44 = vpop.xlane.xlu0 %1448 }
 0x578   : > { %1934 = vrsqrt.f32 %v1463_v39  ;;  %v1457_v0 = vmul.f32 0.03125, %v1449_v44 }
 0x579   : > { %vm1512_vm1 = vcmp.ge.f32.partialorder %v1504_v28, 0.0  ;;  %v1520_v47 = vmul.f32 0.1, %v1504_v28  ;;  %v1488_v48 = vmul.f32 %v2444_v24, %v1474_v42 }
 0x57a   : > { %v1927_v49 = vpop.eup %1926  ;;  %v1465_v50 = vadd.f32 1e-05, %v1457_v0 }
 0x57b   : > { %v1929_v25 = vpop.eup %1928  ;;  %v1528_v52 = vsel %vm1512_vm1, %v1504_v28, %v1520_v47  ;;  %v1502_v54 = vadd.f32 %v2450_v22, %v1488_v48  ;;  %v1477_v55 = vmul.f32 %v1927_v49, %v2412_v43 }
 0x57c   : > { %v1536_v57 = vadd.f32 %v1528_v52, %v2255_v29  ;;  %v1478_v58 = vmul.f32 %v1929_v25, %v2415_v46  ;;  %1936 = vrsqrt.f32 %v1465_v50 }
 0x57d   : > { %vm1510_vm3 = vcmp.ge.f32.partialorder %v1502_v54, 0.0  ;;  %v1518_v35 = vmul.f32 0.1, %v1502_v54  ;;  %v1491_v59 = vmul.f32 %v2444_v24, %v1477_v55 }
 0x57e   : > { %v1931_v60 = vpop.eup %1930  ;;  %1544 = vst.msk [vmem:[#allocation6 + $0x10] sm:$0xff] %vm685_vm8, %v1536_v57  ;;  %v1492_v62 = vmul.f32 %v2444_v24, %v1478_v58 }
 0x57f   : > { %v1933_v1 = vpop.eup %1932  ;;  %v1526_v2 = vsel %vm1510_vm3, %v1502_v54, %v1518_v35  ;;  %v1505_v3 = vadd.f32 %v2450_v22, %v1491_v59  ;;  %v1475_v43 = vmul.f32 %v1931_v60, %v2410_v31 }
 0x580   : > { %v1534_v29 = vadd.f32 %v1526_v2, %v2265_v41  ;;  %v1506_v46 = vadd.f32 %v2450_v22, %v1492_v62  ;;  %v1480_v4 = vmul.f32 %v1933_v1, %v2426_v56 }
 0x581   : > { %vm1513_vm7 = vcmp.ge.f32.partialorder %v1505_v3, 0.0  ;;  %v1521_v5 = vmul.f32 0.1, %v1505_v3  ;;  %v1489_v6 = vmul.f32 %v2444_v24, %v1475_v43 }
 0x582   : > { %v1935_v7 = vpop.eup %1934  ;;  %1542 = vst.msk [vmem:[#allocation6] sm:$0xff] %vm685_vm8, %v1534_v29  ;;  %vm1514_vm9 = vcmp.ge.f32.partialorder %v1506_v46, 0.0  ;;  %v1522_v8 = vmul.f32 0.1, %v1506_v46  ;;  %v1494_v11 = vmul.f32 %v2444_v24, %v1480_v4 }
 0x583   : > { %v1529_v12 = vsel %vm1513_vm7, %v1505_v3, %v1521_v5  ;;  %v1503_v31 = vadd.f32 %v2450_v22, %v1489_v6  ;;  %v1479_v41 = vmul.f32 %v1935_v7, %v2421_v40 }
 0x584   : > { %v1537_v14 = vadd.f32 %v1529_v12, %v2276_v51  ;;  %v1530_v16 = vsel %vm1514_vm9, %v1506_v46, %v1522_v8  ;;  %v1508_v56 = vadd.f32 %v2450_v22, %v1494_v11 }
 0x585   : > { %v1538_v13 = vadd.f32 %v1530_v16, %v2282_v53  ;;  %vm1511_vm10 = vcmp.ge.f32.partialorder %v1503_v31, 0.0  ;;  %v1519_v17 = vmul.f32 0.1, %v1503_v31  ;;  %v1493_v20 = vmul.f32 %v2444_v24, %v1479_v41 }
 0x586   : > { %v1937_v9 = vpop.eup %1936  ;;  %1545 = vst.msk [vmem:[#allocation6 + $0x18] sm:$0xff] %vm685_vm8, %v1537_v14  ;;  %vm1516_vm11 = vcmp.ge.f32.partialorder %v1508_v56, 0.0  ;;  %v1524_v18 = vmul.f32 0.1, %v1508_v56 }
 0x587   : > { %1546 = vst.msk [vmem:[#allocation6 + $0x20] sm:$0xff] %vm685_vm8, %v1538_v13  ;;  %v1527_v40 = vsel %vm1511_vm10, %v1503_v31, %v1519_v17  ;;  %v1507_v51 = vadd.f32 %v2450_v22, %v1493_v20  ;;  %v1481_v21 = vmul.f32 %v1937_v9, %v2431_v61 }
 0x588   : > { %v1535_v53 = vadd.f32 %v1527_v40, %v2290_v37  ;;  %v1532_v23 = vsel %vm1516_vm11, %v1508_v56, %v1524_v18 }
 0x589   : > { %v1540_v15 = vadd.f32 %v1532_v23, %v2296_v63  ;;  %vm1515_vm12 = vcmp.ge.f32.partialorder %v1507_v51, 0.0  ;;  %v1523_v26 = vmul.f32 0.1, %v1507_v51  ;;  %v1495_v27 = vmul.f32 %v2444_v24, %v1481_v21 }
 0x58a   : > { %1543 = vst.msk [vmem:[#allocation6 + $0x8] sm:$0xff] %vm685_vm8, %v1535_v53 }
 0x58b   : > { %1548 = vst.msk [vmem:[#allocation6 + $0x30] sm:$0xff] %vm685_vm8, %v1540_v15  ;;  %v1531_v19 = vsel %vm1515_vm12, %v1507_v51, %v1523_v26  ;;  %v1509_v32 = vadd.f32 %v2450_v22, %v1495_v27 }
 0x58c   : > { %v1539_v33 = vadd.f32 %v1531_v19, %v2306_v45 }
 0x58d   : > { %vm1517_vm13 = vcmp.ge.f32.partialorder %v1509_v32, 0.0  ;;  %v1525_v61 = vmul.f32 0.1, %v1509_v32  ;;  %v1552_v37 = vld [vmem:[#allocation6 + $0x10] ss:$2 sm:$0xff] }
 0x58e   : > { %1547 = vst.msk [vmem:[#allocation6 + $0x28] sm:$0xff] %vm685_vm8, %v1539_v33  ;;  %v1560_v63 = vld [vmem:[#allocation6 + $0x11] ss:$2 sm:$0xff] }
 0x58f   : > { %v1533_v34 = vsel %vm1517_vm13, %v1509_v32, %v1525_v61  ;;  %v1566_v24 = vadd.f32 %v1560_v63, %v1552_v37 }
 0x590   : > { %v1541_v36 = vadd.f32 %v1533_v34, %v2314_v10 }
 0x591   : > { %v1550_v30 = vld [vmem:[#allocation6] ss:$2 sm:$0xff]  ;;  %v1558_v38 = vld [vmem:[#allocation6 + $0x1] ss:$2 sm:$0xff]  ;;  %v1570_v39 = vmul.f32 0.5, %v1566_v24 }
 0x592   : > { %1549 = vst.msk [vmem:[#allocation6 + $0x38] sm:$0xff] %vm685_vm8, %v1541_v36  ;;  %v1565_v22 = vadd.f32 %v1558_v38, %v1550_v30 }
 0x593   : > { %1574 = vst.msk [vmem:[%s325_s21 + $0x8] sm:$0xff] %vm685_vm8, %v1570_v39 }
 0x594   : > { %v1569_v45 = vmul.f32 0.5, %v1565_v22 }
 0x595   : > { %v1554_v28 = vld [vmem:[#allocation6 + $0x20] ss:$2 sm:$0xff]  ;;  %v1562_v42 = vld [vmem:[#allocation6 + $0x21] ss:$2 sm:$0xff] }
 0x596   : > { %v1567_v44 = vadd.f32 %v1562_v42, %v1554_v28  ;;  %1573 = vst.msk [vmem:[%s325_s21] sm:$0xff] %vm685_vm8, %v1569_v45 }
 0x598   : > { %v1571_v0 = vmul.f32 0.5, %v1567_v44 }
 0x599   : > { %v1556_v10 = vld [vmem:[#allocation6 + $0x30] ss:$2 sm:$0xff]  ;;  %v1564_v47 = vld [vmem:[#allocation6 + $0x31] ss:$2 sm:$0xff] }
 0x59a   : > { %v1568_v48 = vadd.f32 %v1564_v47, %v1556_v10  ;;  %1575 = vst.msk [vmem:[%s325_s21 + $0x10] sm:$0xff] %vm685_vm8, %v1571_v0 }
 0x59c   : > { %v1572_v49 = vmul.f32 0.5, %v1568_v48 }
 0x59e   : > { %1576 = vst.msk [vmem:[%s325_s21 + $0x18] sm:$0xff] %vm685_vm8, %v1572_v49 }
 0x59f   : > { %1951 = shalt.err (!%p1948_p3)
}
 0x5a0   : > { %s1952_s16 = scalar_lea.hbm %s2501_s26, 512  ;;  %s1956_s22 = scalar_lea.hbm %s2559_s9, 1024 }
 0x5a1   : > { %p1953_p4 = scmp.ne.s32.totalorder %s2501_s26, %s1952_s16  ;;  %p1957_p9 = scmp.lt.u32.totalorder %s2501_s26, %s2559_s9 }
 0x5a2   : > { %p1958_p10 = scmp.lt.u32.totalorder %s1956_s22, %s1952_s16  ;;  %p1960_p12 = scmp.lt.u32.totalorder %s1952_s16, %s2501_s26 }
 0x5a3   : > { %p1954_p7 = pnand %p1953_p4, %p2099_p5 }
 0x5a4   : > { %p1959_p11 = por %p1958_p10, %p1957_p9 }
 0x5a5   : > { %p1955_p8 = pneg %p1954_p7 }
 0x5a6   : > { %p1961_p13 = por %p1960_p12, %p1959_p11 }
 0x5a8   : > { %p1962_p0 = pnand %p1961_p13, %p1955_p8 }
 0x5aa   : > { %1965 = shalt.err (!%p1962_p0)
}
 0x5ab   : > { %s2010_s28 = smov 128  }
 0x5ac   : > { %1811 = dma.vmem_to_hbm [thread:$0]  (%p2099_p5), %s2503_s24, 512, %s2501_s26, %s2508_s13, %s2010_s28, %s2010_s28, %s2004_s27  }
 0x5ad PF: > { %p1817_p1 = scmp.ge.s32.totalorder %s2000_s12, 2  ;;  %s1606_s14 = sand.u32 1, %s1988_s30  }
 0x5ae   : > { %s1607_s17 = scalar_lea.sflag [#allocation8], %s1606_s14 }
 0x5af   : > { %p1814_p2 = pnand %p1817_p1, %p2103_p6 }
 0x5b1   : > { %1983 = dma.done.wait (!%p1814_p2), %s1607_s17, 512  }
 0x5b2   : > { %1985 = vsyncadd (!%p1814_p2), %s1607_s17, 4294966784  ;;  %p19_p3 = scmp.ge.s32.totalorder %s2086_s15, 4   ;;  %s2562_s30 = smov %s1992_s10 }
 0x5b3   : > { %s2563_s10 = smov %s1996_s11  ;;  %s2564_s11 = smov %s2097_s18 }
 0x5b4   : > { %s2565_s12 = smov %s2086_s15  ;;  %21 = sbr.rel (!%p19_p3) target bundleno = 3 (0x3), region = 98 }
 0x5bb   :  { %1612 = vsyncpa [#allocation8], 1 }
 0x5bc   :  { %1614 = vsyncpa [#allocation8 + $0x1], 1 }

</bundles_post_ra>
